<compile_context>
chip_gen: v5e
topology: v5e:2x2
jax: 0.10.0
libtpu: 0.0.40
codegen_flags: <defaults>
</compile_context>

<pallas_src>
import functools

import jax
import jax.numpy as jnp
import numpy as np
from jax.experimental import pallas as pl
from jax.experimental.pallas import tpu as pltpu

# Fixed architecture of FCNBaseline
K1, K2, K3 = 8, 5, 3          # conv kernel sizes
C1, C2, C3 = 128, 256, 128    # conv output channels
BN_EPS = 1e-5


def _round_up(v, m):
    return (v + m - 1) // m * m


# ----------------------------- kernel -----------------------------

def _fcn_kernel(BB, Lp, L,
                xc_ref,                    # (BB, Lp, KCp)     bf16 im2col'd input block
                w1_ref, s1_ref,            # (KCp, C1) bf16,   (1, C1) f32
                w2_ref, s2_ref,            # (K2*C1, C2) bf16, (1, C2) f32
                w3_ref, s3_ref,            # (K3*C2, C3) bf16, (1, C3) f32
                wf_ref, bf_ref,            # (C3, n_cls) f32,  (1, n_cls) f32
                out_ref,                   # (1, BB, n_cls) f32
                im2_ref, im3_ref):         # bf16 in-kernel im2col scratches
    """One batch block of the FCN forward: 3 conv blocks + mean pool + linear."""
    M = BB * Lp
    KCp = xc_ref.shape[2]
    c1 = w1_ref.shape[1]
    kc2, c2 = w2_ref.shape
    kc3, c3 = w3_ref.shape
    k2, k3 = kc2 // c1, kc3 // c2
    p2 = (k2 - 1) // 2            # "same" pad for k=5 -> 2/2
    p3 = (k3 - 1) // 2            # "same" pad for k=3 -> 1/1

    # ---- ConvBlock 1: single fused im2col matmul + folded-BN shift + ReLU ----
    xc = xc_ref[...].reshape(M, KCp)                                    # (M, KCp)
    a1 = jnp.dot(xc, w1_ref[...], preferred_element_type=jnp.float32)
    h1 = jnp.maximum(a1 + s1_ref[...], 0.0).astype(jnp.bfloat16).reshape(BB, Lp, c1)

    # ---- ConvBlock 2: in-kernel im2col -> ONE (M, K2*C1) x (K2*C1, C2) matmul ----
    # Column block k holds h1 shifted by (k - p2) along length with "same" zero fill.
    # Rows j >= L (sequence-alignment padding) are never read as inputs: j1 <= L - d.
    for k in range(k2):
        d = k - p2
        j0 = max(0, -d)
        j1 = min(Lp, L - d)
        cs = k * c1
        if j0 > 0:
            im2_ref[:, 0:j0, cs:cs + c1] = jnp.zeros((BB, j0, c1), jnp.bfloat16)
        im2_ref[:, j0:j1, cs:cs + c1] = h1[:, j0 + d:j1 + d, :]
        if j1 < Lp:
            im2_ref[:, j1:Lp, cs:cs + c1] = jnp.zeros((BB, Lp - j1, c1), jnp.bfloat16)
    a2 = jnp.dot(im2_ref[...].reshape(M, kc2), w2_ref[...],
                 preferred_element_type=jnp.float32)
    h2 = jnp.maximum(a2 + s2_ref[...], 0.0).astype(jnp.bfloat16).reshape(BB, Lp, c2)

    # ---- ConvBlock 3: in-kernel im2col -> ONE (M, K3*C2) x (K3*C2, C3) matmul ----
    for k in range(k3):
        d = k - p3
        j0 = max(0, -d)
        j1 = min(Lp, L - d)
        cs = k * c2
        if j0 > 0:
            im3_ref[:, 0:j0, cs:cs + c2] = jnp.zeros((BB, j0, c2), jnp.bfloat16)
        im3_ref[:, j0:j1, cs:cs + c2] = h2[:, j0 + d:j1 + d, :]
        if j1 < Lp:
            im3_ref[:, j1:Lp, cs:cs + c2] = jnp.zeros((BB, Lp - j1, c2), jnp.bfloat16)
    a3 = jnp.dot(im3_ref[...].reshape(M, kc3), w3_ref[...],
                 preferred_element_type=jnp.float32)
    h3 = jnp.maximum(a3 + s3_ref[...], 0.0).reshape(BB, Lp, c3)        # f32

    # ---- global average pool over the TRUE length + final Linear (tiny, f32) ----
    pooled = jnp.sum(h3[:, 0:L, :], axis=1) * (1.0 / L)                # (BB, C3)
    final = jnp.dot(pooled, wf_ref[...],
                    preferred_element_type=jnp.float32) + bf_ref[...]  # (BB, n_cls)
    out_ref[...] = final.reshape(1, BB, -1)


# ----------------------------- wrapper -----------------------------

def _tpu_generation_params():
    """(target MXU rows per block, vmem_limit_bytes) — generation aware, safe fallback."""
    target_rows, vmem_limit = 1024, 32 * 1024 * 1024
    try:
        kind = jax.devices()[0].device_kind.lower()
    except Exception:  # pragma: no cover - conservative fallback
        return target_rows, vmem_limit
    if any(g in kind for g in ("v2", "v3", "v4", "v5")):
        # 128-deep MXU; physical VMEM 128 MiB but default scoped limit is small.
        return 512, 64 * 1024 * 1024
    if "v7" in kind:
        # 256-deep MXU; only 64 MiB VMEM per TensorCore -> keep headroom.
        return 2048, 32 * 1024 * 1024
    # v6e (and unknown newer): 256-deep MXU, 128 MiB VMEM.
    return 2048, 64 * 1024 * 1024


def _pick_batch_block(B, Lp, target_rows):
    """Largest divisor of B with BB*Lp <= target, preferring >=2 (and even) grid steps."""
    cands = [d for d in range(1, B + 1)
             if B % d == 0 and d * Lp <= max(Lp, target_rows)]
    even = [d for d in cands if (B // d) >= 2 and (B // d) % 2 == 0]
    multi = [d for d in cands if (B // d) >= 2]
    if even:
        return max(even)
    if multi:
        return max(multi)
    return max(cands)


def fcn_forward(x, folded_params, *, batch_block=None):
    """x: (B, L, C_in) float32 (same orientation as the PyTorch module's input)."""
    B, L, c_in = x.shape
    (w1c, s1), (w2c, s2), (w3c, s3), (wf, bf) = folded_params
    num_classes = wf.shape[1]
    KCp = w1c.shape[0]                      # padded conv1 contraction (multiple of 128)
    KC = K1 * c_in

    Lp = _round_up(L, 16)                   # bf16 sublane-packing alignment
    target_rows, vmem_limit = _tpu_generation_params()
    if batch_block is None:
        batch_block = _pick_batch_block(B, Lp, target_rows)
    BB = batch_block
    assert B % BB == 0, "batch_block must divide the batch size"
    grid = (B // BB,)

    # im2col for ConvBlock1 ("same" padding for k=8, stride=1 -> 3 left / 4 right,
    # matching F.pad(input, [0, 1]) + conv padding=3).  Tap-major channel layout matches
    # the (K1*C_in, C1) reshape of the folded conv1 weight.  Length is padded to Lp and
    # the contraction dim is zero-padded to KCp (lane-dense DMA + full MXU feed).
    x_pad = jnp.pad(x.astype(jnp.float32), ((0, 0), (3, 4 + Lp - L), (0, 0)))
    x_col = jnp.concatenate([x_pad[:, k:k + Lp, :] for k in range(K1)], axis=-1)
    if KCp > KC:
        x_col = jnp.pad(x_col, ((0, 0), (0, 0), (0, KCp - KC)))
    x_col = x_col.astype(jnp.bfloat16)                                  # (B, Lp, KCp)

    kernel = functools.partial(_fcn_kernel, BB, Lp, L)
    out = pl.pallas_call(
        kernel,
        out_shape=jax.ShapeDtypeStruct((B // BB, BB, num_classes), jnp.float32),
        grid_spec=pltpu.PrefetchScalarGridSpec(
            num_scalar_prefetch=0,
            grid=grid,
            in_specs=[
                pl.BlockSpec((BB, Lp, KCp), lambda i: (i, 0, 0)),
                pl.BlockSpec(w1c.shape, lambda i: (0, 0)),
                pl.BlockSpec(s1.shape, lambda i: (0, 0)),
                pl.BlockSpec(w2c.shape, lambda i: (0, 0)),
                pl.BlockSpec(s2.shape, lambda i: (0, 0)),
                pl.BlockSpec(w3c.shape, lambda i: (0, 0)),
                pl.BlockSpec(s3.shape, lambda i: (0, 0)),
                pl.BlockSpec(wf.shape, lambda i: (0, 0)),
                pl.BlockSpec(bf.shape, lambda i: (0, 0)),
            ],
            out_specs=pl.BlockSpec((1, BB, num_classes), lambda i: (i, 0, 0)),
            scratch_shapes=[
                pltpu.VMEM((BB, Lp, K2 * C1), jnp.bfloat16),   # conv2 im2col (K=640)
                pltpu.VMEM((BB, Lp, K3 * C2), jnp.bfloat16),   # conv3 im2col (K=768)
            ],
        ),
        compiler_params=pltpu.CompilerParams(
            dimension_semantics=("parallel",),
            vmem_limit_bytes=vmem_limit,
        ),
    )(x_col, w1c, s1, w2c, s2, w3c, s3, wf, bf)
    return out.reshape(B, num_classes)


# ----------------------------- parameter setup (glue) -----------------------------

def init_raw_params(key, c_in, num_classes):
    """Deterministic synthetic parameters in PyTorch conventions."""
    specs = [(c_in, C1, K1), (C1, C2, K2), (C2, C3, K3)]
    keys = jax.random.split(key, 5)
    convs = []
    for i, (ci, co, k) in enumerate(specs):
        kw, kb, kg, kbe, km, kv = jax.random.split(keys[i], 6)
        bound = 1.0 / np.sqrt(ci * k)
        w = jax.random.uniform(kw, (co, ci, k), jnp.float32, -bound, bound)
        b = jax.random.uniform(kb, (co,), jnp.float32, -bound, bound)
        gamma = jax.random.uniform(kg, (co,), jnp.float32, 0.8, 1.2)
        beta = jax.random.uniform(kbe, (co,), jnp.float32, -0.1, 0.1)
        mean = jax.random.uniform(km, (co,), jnp.float32, -0.1, 0.1)
        var = jax.random.uniform(kv, (co,), jnp.float32, 0.5, 1.5)
        convs.append((w, b, gamma, beta, mean, var))
    bound = 1.0 / np.sqrt(C3)
    wf = jax.random.uniform(keys[3], (num_classes, C3), jnp.float32, -bound, bound)
    bf = jax.random.uniform(keys[4], (num_classes,), jnp.float32, -bound, bound)
    return {"convs": convs, "final": (wf, bf)}


def fold_params(raw):
    """Fold eval-mode BatchNorm into conv weights; store im2col-shaped bf16 weights."""
    folded = []
    for idx, (w, b, gamma, beta, mean, var) in enumerate(raw["convs"]):
        scale = gamma / jnp.sqrt(var + BN_EPS)                        # (C_out,)
        taps = jnp.transpose(w, (2, 1, 0)) * scale[None, None, :]     # (K, C_in, C_out)
        shift = ((b - mean) * scale + beta).reshape(1, -1).astype(jnp.float32)
        taps = taps.reshape(-1, taps.shape[-1])                       # (K*C_in, C_out)
        if idx == 0:
            # Pad conv1's contraction dim to a multiple of 128 (lane-dense MXU feed).
            kcp = _round_up(taps.shape[0], 128)
            taps = jnp.pad(taps, ((0, kcp - taps.shape[0]), (0, 0)))
        folded.append((taps.astype(jnp.bfloat16), shift))
    wf, bf = raw["final"]
    folded.append((wf.T.astype(jnp.float32), bf.reshape(1, -1).astype(jnp.float32)))
    return folded


# ----------------------------- plain-JAX reference -----------------------------

def ref_forward(x, raw):
    """Independent f32 reference using lax.conv_general_dilated (NLC layout)."""
    pads = [(3, 4), (2, 2), (1, 1)]  # "same" pads for k = 8, 5, 3 (stride 1)
    h = x.astype(jnp.float32)
    for (w, b, gamma, beta, mean, var), (lpad, rpad) in zip(raw["convs"], pads):
        xp = jnp.pad(h, ((0, 0), (lpad, rpad), (0, 0)))
        y = jax.lax.conv_general_dilated(
            xp, jnp.transpose(w, (2, 1, 0)), window_strides=(1,),
            padding="VALID", dimension_numbers=("NWC", "WIO", "NWC"))
        y = y + b[None, None, :]
        y = (y - mean) / jnp.sqrt(var + BN_EPS) * gamma + beta
        h = jnp.maximum(y, 0.0)
    pooled = h.mean(axis=1)
    wf, bf = raw["final"]
    return pooled @ wf.T + bf


if __name__ == "__main__":
    key = jax.random.PRNGKey(0)
    kp, kx, kp2, kx2 = jax.random.split(key, 4)

    # ---- primary small config (B=2, L=16, C_in=4, 3 classes) ----
    B, L, C_IN, NUM_CLASSES = 2, 16, 4, 3
    raw = init_raw_params(kp, C_IN, NUM_CLASSES)
    folded = fold_params(raw)
    x = jax.random.normal(kx, (B, L, C_IN), jnp.float32)

    out = jax.block_until_ready(fcn_forward(x, folded))
    ref = jax.block_until_ready(ref_forward(x, raw))
    # bf16 MXU operands vs f32 reference -> loosened tolerances
    np.testing.assert_allclose(np.asarray(out), np.asarray(ref), rtol=5e-2, atol=5e-2)
    assert out.shape == (B, NUM_CLASSES)

    # ---- secondary config: multi-step grid (grid=(4,)) and L not a multiple of 16 ----
    B2, L2, C_IN2, NC2 = 8, 24, 3, 5
    raw2 = init_raw_params(kp2, C_IN2, NC2)
    folded2 = fold_params(raw2)
    x2 = jax.random.normal(kx2, (B2, L2, C_IN2), jnp.float32)

    out2 = jax.block_until_ready(fcn_forward(x2, folded2, batch_block=2))
    ref2 = jax.block_until_ready(ref_forward(x2, raw2))
    np.testing.assert_allclose(np.asarray(out2), np.asarray(ref2), rtol=5e-2, atol=5e-2)
    assert out2.shape == (B2, NC2)

    print("KERNEL_OK")
</pallas_src>

<mosaic_0001>
module attributes {stable_mosaic.version = 11 : i64} {
  func.func @_fcn_kernel(%arg0: i32, %arg1: memref<1x16x128xbf16, #tpu.memory_space<vmem>>, %arg2: memref<128x128xbf16, #tpu.memory_space<vmem>>, %arg3: memref<1x128xf32, #tpu.memory_space<vmem>>, %arg4: memref<640x256xbf16, #tpu.memory_space<vmem>>, %arg5: memref<1x256xf32, #tpu.memory_space<vmem>>, %arg6: memref<768x128xbf16, #tpu.memory_space<vmem>>, %arg7: memref<1x128xf32, #tpu.memory_space<vmem>>, %arg8: memref<128x3xf32, #tpu.memory_space<vmem>>, %arg9: memref<1x3xf32, #tpu.memory_space<vmem>>, %arg10: memref<1x1x3xf32, #tpu.memory_space<vmem>>, %arg11: memref<1x16x640xbf16, #tpu.memory_space<vmem>>, %arg12: memref<1x16x768xbf16, #tpu.memory_space<vmem>>) attributes {dimension_semantics = [#tpu.dimension_semantics<parallel>], iteration_bounds = array<i64: 2>, scalar_prefetch = 0 : i64, scratch_operands = 2 : i64, tpu.core_type = #tpu.core_type<tc>, window_params = [{transform_indices = @transform_0, window_bounds = array<i64: 1, 16, 128>}, {pipeline_mode = #tpu.pipeline_mode<synchronous>, transform_indices = @transform_1, window_bounds = array<i64: 128, 128>}, {pipeline_mode = #tpu.pipeline_mode<synchronous>, transform_indices = @transform_2, window_bounds = array<i64: 1, 128>}, {pipeline_mode = #tpu.pipeline_mode<synchronous>, transform_indices = @transform_3, window_bounds = array<i64: 640, 256>}, {pipeline_mode = #tpu.pipeline_mode<synchronous>, transform_indices = @transform_4, window_bounds = array<i64: 1, 256>}, {pipeline_mode = #tpu.pipeline_mode<synchronous>, transform_indices = @transform_5, window_bounds = array<i64: 768, 128>}, {pipeline_mode = #tpu.pipeline_mode<synchronous>, transform_indices = @transform_6, window_bounds = array<i64: 1, 128>}, {pipeline_mode = #tpu.pipeline_mode<synchronous>, transform_indices = @transform_7, window_bounds = array<i64: 128, 3>}, {pipeline_mode = #tpu.pipeline_mode<synchronous>, transform_indices = @transform_8, window_bounds = array<i64: 1, 3>}, {transform_indices = @transform_9, window_bounds = array<i64: 1, 1, 3>}]} {
    %c0 = arith.constant 0 : index
    %c0_0 = arith.constant 0 : index
    %c0_1 = arith.constant 0 : index
    %0 = vector.load %arg1[%c0, %c0_0, %c0_1] : memref<1x16x128xbf16, #tpu.memory_space<vmem>>, vector<1x16x128xbf16>
    %1 = vector.shape_cast %0 : vector<1x16x128xbf16> to vector<16x128xbf16>
    %c0_2 = arith.constant 0 : index
    %c0_3 = arith.constant 0 : index
    %2 = vector.load %arg2[%c0_2, %c0_3] : memref<128x128xbf16, #tpu.memory_space<vmem>>, vector<128x128xbf16>
    %cst = arith.constant dense<0.000000e+00> : vector<16x128xf32>
    %3 = tpu.matmul %1, %2, %cst {dimension_numbers = #tpu.dot_dimension_numbers<[1], [0], [0], [1], [0, 0, 1, 1], [], []>} : vector<16x128xbf16>, vector<128x128xbf16>, vector<16x128xf32> -> vector<16x128xf32>
    %c0_4 = arith.constant 0 : index
    %c0_5 = arith.constant 0 : index
    %4 = vector.load %arg3[%c0_4, %c0_5] : memref<1x128xf32, #tpu.memory_space<vmem>>, vector<1x128xf32>
    %5 = vector.broadcast %4 : vector<1x128xf32> to vector<16x128xf32>
    %6 = arith.addf %3, %5 : vector<16x128xf32>
    %cst_6 = arith.constant 0.000000e+00 : f32
    %7 = vector.broadcast %cst_6 : f32 to vector<16x128xf32>
    %8 = arith.maximumf %6, %7 : vector<16x128xf32>
    %9 = arith.truncf %8 : vector<16x128xf32> to vector<16x128xbf16>
    %10 = vector.shape_cast %9 : vector<16x128xbf16> to vector<1x16x128xbf16>
    %cst_7 = arith.constant 0.000000e+00 : bf16
    %11 = vector.broadcast %cst_7 : bf16 to vector<1x2x128xbf16>
    %c0_8 = arith.constant 0 : index
    %c0_9 = arith.constant 0 : index
    %c0_10 = arith.constant 0 : index
    %12 = vector.load %arg11[%c0_8, %c0_9, %c0_10] : memref<1x16x640xbf16, #tpu.memory_space<vmem>>, vector<1x2x128xbf16>
    tpu.vector_store %arg11[%c0_8, %c0_9, %c0_10], %11 {strides = array<i32>} : memref<1x16x640xbf16, #tpu.memory_space<vmem>>, vector<1x2x128xbf16>,
    %13 = vector.extract_strided_slice %10 {offsets = [0, 0, 0], sizes = [1, 14, 128], strides = [1, 1, 1]} : vector<1x16x128xbf16> to vector<1x14x128xbf16>
    %c0_11 = arith.constant 0 : index
    %c2 = arith.constant 2 : index
    %c0_12 = arith.constant 0 : index
    %14 = vector.load %arg11[%c0_11, %c2, %c0_12] : memref<1x16x640xbf16, #tpu.memory_space<vmem>>, vector<1x14x128xbf16>
    tpu.vector_store %arg11[%c0_11, %c2, %c0_12], %13 {strides = array<i32>} : memref<1x16x640xbf16, #tpu.memory_space<vmem>>, vector<1x14x128xbf16>,
    %cst_13 = arith.constant 0.000000e+00 : bf16
    %15 = vector.broadcast %cst_13 : bf16 to vector<1x1x128xbf16>
    %c0_14 = arith.constant 0 : index
    %c0_15 = arith.constant 0 : index
    %c128 = arith.constant 128 : index
    %16 = vector.load %arg11[%c0_14, %c0_15, %c128] : memref<1x16x640xbf16, #tpu.memory_space<vmem>>, vector<1x1x128xbf16>
    tpu.vector_store %arg11[%c0_14, %c0_15, %c128], %15 {strides = array<i32>} : memref<1x16x640xbf16, #tpu.memory_space<vmem>>, vector<1x1x128xbf16>,
    %17 = vector.extract_strided_slice %10 {offsets = [0, 0, 0], sizes = [1, 15, 128], strides = [1, 1, 1]} : vector<1x16x128xbf16> to vector<1x15x128xbf16>
    %c0_16 = arith.constant 0 : index
    %c1 = arith.constant 1 : index
    %c128_17 = arith.constant 128 : index
    %18 = vector.load %arg11[%c0_16, %c1, %c128_17] : memref<1x16x640xbf16, #tpu.memory_space<vmem>>, vector<1x15x128xbf16>
    tpu.vector_store %arg11[%c0_16, %c1, %c128_17], %17 {strides = array<i32>} : memref<1x16x640xbf16, #tpu.memory_space<vmem>>, vector<1x15x128xbf16>,
    %c0_18 = arith.constant 0 : index
    %c0_19 = arith.constant 0 : index
    %c256 = arith.constant 256 : index
    %19 = vector.load %arg11[%c0_18, %c0_19, %c256] : memref<1x16x640xbf16, #tpu.memory_space<vmem>>, vector<1x16x128xbf16>
    tpu.vector_store %arg11[%c0_18, %c0_19, %c256], %10 {strides = array<i32>} : memref<1x16x640xbf16, #tpu.memory_space<vmem>>, vector<1x16x128xbf16>,
    %20 = vector.extract_strided_slice %10 {offsets = [0, 1, 0], sizes = [1, 15, 128], strides = [1, 1, 1]} : vector<1x16x128xbf16> to vector<1x15x128xbf16>
    %c0_20 = arith.constant 0 : index
    %c0_21 = arith.constant 0 : index
    %c384 = arith.constant 384 : index
    %21 = vector.load %arg11[%c0_20, %c0_21, %c384] : memref<1x16x640xbf16, #tpu.memory_space<vmem>>, vector<1x15x128xbf16>
    tpu.vector_store %arg11[%c0_20, %c0_21, %c384], %20 {strides = array<i32>} : memref<1x16x640xbf16, #tpu.memory_space<vmem>>, vector<1x15x128xbf16>,
    %cst_22 = arith.constant 0.000000e+00 : bf16
    %22 = vector.broadcast %cst_22 : bf16 to vector<1x1x128xbf16>
    %c0_23 = arith.constant 0 : index
    %c15 = arith.constant 15 : index
    %c384_24 = arith.constant 384 : index
    %23 = vector.load %arg11[%c0_23, %c15, %c384_24] : memref<1x16x640xbf16, #tpu.memory_space<vmem>>, vector<1x1x128xbf16>
    tpu.vector_store %arg11[%c0_23, %c15, %c384_24], %22 {strides = array<i32>} : memref<1x16x640xbf16, #tpu.memory_space<vmem>>, vector<1x1x128xbf16>,
    %24 = vector.extract_strided_slice %10 {offsets = [0, 2, 0], sizes = [1, 14, 128], strides = [1, 1, 1]} : vector<1x16x128xbf16> to vector<1x14x128xbf16>
    %c0_25 = arith.constant 0 : index
    %c0_26 = arith.constant 0 : index
    %c512 = arith.constant 512 : index
    %25 = vector.load %arg11[%c0_25, %c0_26, %c512] : memref<1x16x640xbf16, #tpu.memory_space<vmem>>, vector<1x14x128xbf16>
    tpu.vector_store %arg11[%c0_25, %c0_26, %c512], %24 {strides = array<i32>} : memref<1x16x640xbf16, #tpu.memory_space<vmem>>, vector<1x14x128xbf16>,
    %cst_27 = arith.constant 0.000000e+00 : bf16
    %26 = vector.broadcast %cst_27 : bf16 to vector<1x2x128xbf16>
    %c0_28 = arith.constant 0 : index
    %c14 = arith.constant 14 : index
    %c512_29 = arith.constant 512 : index
    %27 = vector.load %arg11[%c0_28, %c14, %c512_29] : memref<1x16x640xbf16, #tpu.memory_space<vmem>>, vector<1x2x128xbf16>
    tpu.vector_store %arg11[%c0_28, %c14, %c512_29], %26 {strides = array<i32>} : memref<1x16x640xbf16, #tpu.memory_space<vmem>>, vector<1x2x128xbf16>,
    %c0_30 = arith.constant 0 : index
    %c0_31 = arith.constant 0 : index
    %c0_32 = arith.constant 0 : index
    %28 = vector.load %arg11[%c0_30, %c0_31, %c0_32] : memref<1x16x640xbf16, #tpu.memory_space<vmem>>, vector<1x16x640xbf16>
    %29 = vector.shape_cast %28 : vector<1x16x640xbf16> to vector<16x640xbf16>
    %c0_33 = arith.constant 0 : index
    %c0_34 = arith.constant 0 : index
    %30 = vector.load %arg4[%c0_33, %c0_34] : memref<640x256xbf16, #tpu.memory_space<vmem>>, vector<640x256xbf16>
    %cst_35 = arith.constant dense<0.000000e+00> : vector<16x256xf32>
    %31 = tpu.matmul %29, %30, %cst_35 {dimension_numbers = #tpu.dot_dimension_numbers<[1], [0], [0], [1], [0, 0, 1, 1], [], []>} : vector<16x640xbf16>, vector<640x256xbf16>, vector<16x256xf32> -> vector<16x256xf32>
    %c0_36 = arith.constant 0 : index
    %c0_37 = arith.constant 0 : index
    %32 = vector.load %arg5[%c0_36, %c0_37] : memref<1x256xf32, #tpu.memory_space<vmem>>, vector<1x256xf32>
    %33 = vector.broadcast %32 : vector<1x256xf32> to vector<16x256xf32>
    %34 = arith.addf %31, %33 : vector<16x256xf32>
    %cst_38 = arith.constant 0.000000e+00 : f32
    %35 = vector.broadcast %cst_38 : f32 to vector<16x256xf32>
    %36 = arith.maximumf %34, %35 : vector<16x256xf32>
    %37 = arith.truncf %36 : vector<16x256xf32> to vector<16x256xbf16>
    %38 = vector.shape_cast %37 : vector<16x256xbf16> to vector<1x16x256xbf16>
    %cst_39 = arith.constant 0.000000e+00 : bf16
    %39 = vector.broadcast %cst_39 : bf16 to vector<1x1x256xbf16>
    %c0_40 = arith.constant 0 : index
    %c0_41 = arith.constant 0 : index
    %c0_42 = arith.constant 0 : index
    %40 = vector.load %arg12[%c0_40, %c0_41, %c0_42] : memref<1x16x768xbf16, #tpu.memory_space<vmem>>, vector<1x1x256xbf16>
    tpu.vector_store %arg12[%c0_40, %c0_41, %c0_42], %39 {strides = array<i32>} : memref<1x16x768xbf16, #tpu.memory_space<vmem>>, vector<1x1x256xbf16>,
    %41 = vector.extract_strided_slice %38 {offsets = [0, 0, 0], sizes = [1, 15, 256], strides = [1, 1, 1]} : vector<1x16x256xbf16> to vector<1x15x256xbf16>
    %c0_43 = arith.constant 0 : index
    %c1_44 = arith.constant 1 : index
    %c0_45 = arith.constant 0 : index
    %42 = vector.load %arg12[%c0_43, %c1_44, %c0_45] : memref<1x16x768xbf16, #tpu.memory_space<vmem>>, vector<1x15x256xbf16>
    tpu.vector_store %arg12[%c0_43, %c1_44, %c0_45], %41 {strides = array<i32>} : memref<1x16x768xbf16, #tpu.memory_space<vmem>>, vector<1x15x256xbf16>,
    %c0_46 = arith.constant 0 : index
    %c0_47 = arith.constant 0 : index
    %c256_48 = arith.constant 256 : index
    %43 = vector.load %arg12[%c0_46, %c0_47, %c256_48] : memref<1x16x768xbf16, #tpu.memory_space<vmem>>, vector<1x16x256xbf16>
    tpu.vector_store %arg12[%c0_46, %c0_47, %c256_48], %38 {strides = array<i32>} : memref<1x16x768xbf16, #tpu.memory_space<vmem>>, vector<1x16x256xbf16>,
    %44 = vector.extract_strided_slice %38 {offsets = [0, 1, 0], sizes = [1, 15, 256], strides = [1, 1, 1]} : vector<1x16x256xbf16> to vector<1x15x256xbf16>
    %c0_49 = arith.constant 0 : index
    %c0_50 = arith.constant 0 : index
    %c512_51 = arith.constant 512 : index
    %45 = vector.load %arg12[%c0_49, %c0_50, %c512_51] : memref<1x16x768xbf16, #tpu.memory_space<vmem>>, vector<1x15x256xbf16>
    tpu.vector_store %arg12[%c0_49, %c0_50, %c512_51], %44 {strides = array<i32>} : memref<1x16x768xbf16, #tpu.memory_space<vmem>>, vector<1x15x256xbf16>,
    %cst_52 = arith.constant 0.000000e+00 : bf16
    %46 = vector.broadcast %cst_52 : bf16 to vector<1x1x256xbf16>
    %c0_53 = arith.constant 0 : index
    %c15_54 = arith.constant 15 : index
    %c512_55 = arith.constant 512 : index
    %47 = vector.load %arg12[%c0_53, %c15_54, %c512_55] : memref<1x16x768xbf16, #tpu.memory_space<vmem>>, vector<1x1x256xbf16>
    tpu.vector_store %arg12[%c0_53, %c15_54, %c512_55], %46 {strides = array<i32>} : memref<1x16x768xbf16, #tpu.memory_space<vmem>>, vector<1x1x256xbf16>,
    %c0_56 = arith.constant 0 : index
    %c0_57 = arith.constant 0 : index
    %c0_58 = arith.constant 0 : index
    %48 = vector.load %arg12[%c0_56, %c0_57, %c0_58] : memref<1x16x768xbf16, #tpu.memory_space<vmem>>, vector<1x16x768xbf16>
    %49 = vector.shape_cast %48 : vector<1x16x768xbf16> to vector<16x768xbf16>
    %c0_59 = arith.constant 0 : index
    %c0_60 = arith.constant 0 : index
    %50 = vector.load %arg6[%c0_59, %c0_60] : memref<768x128xbf16, #tpu.memory_space<vmem>>, vector<768x128xbf16>
    %cst_61 = arith.constant dense<0.000000e+00> : vector<16x128xf32>
    %51 = tpu.matmul %49, %50, %cst_61 {dimension_numbers = #tpu.dot_dimension_numbers<[1], [0], [0], [1], [0, 0, 1, 1], [], []>} : vector<16x768xbf16>, vector<768x128xbf16>, vector<16x128xf32> -> vector<16x128xf32>
    %c0_62 = arith.constant 0 : index
    %c0_63 = arith.constant 0 : index
    %52 = vector.load %arg7[%c0_62, %c0_63] : memref<1x128xf32, #tpu.memory_space<vmem>>, vector<1x128xf32>
    %53 = vector.broadcast %52 : vector<1x128xf32> to vector<16x128xf32>
    %54 = arith.addf %51, %53 : vector<16x128xf32>
    %cst_64 = arith.constant 0.000000e+00 : f32
    %55 = vector.broadcast %cst_64 : f32 to vector<16x128xf32>
    %56 = arith.maximumf %54, %55 : vector<16x128xf32>
    %57 = vector.shape_cast %56 : vector<16x128xf32> to vector<1x16x128xf32>
    %cst_65 = arith.constant dense<0.000000e+00> : vector<1x128xf32>
    %58 = vector.multi_reduction <add>, %57, %cst_65 [1] : vector<1x16x128xf32> to vector<1x128xf32>
    %cst_66 = arith.constant 6.250000e-02 : f32
    %59 = vector.broadcast %cst_66 : f32 to vector<1x128xf32>
    %60 = arith.mulf %58, %59 : vector<1x128xf32>
    %c0_67 = arith.constant 0 : index
    %c0_68 = arith.constant 0 : index
    %61 = vector.load %arg8[%c0_67, %c0_68] : memref<128x3xf32, #tpu.memory_space<vmem>>, vector<128x3xf32>
    %cst_69 = arith.constant dense<0.000000e+00> : vector<1x3xf32>
    %62 = tpu.matmul %60, %61, %cst_69 {dimension_numbers = #tpu.dot_dimension_numbers<[1], [0], [0], [1], [0, 0, 1, 1], [], []>} : vector<1x128xf32>, vector<128x3xf32>, vector<1x3xf32> -> vector<1x3xf32>
    %c0_70 = arith.constant 0 : index
    %c0_71 = arith.constant 0 : index
    %63 = vector.load %arg9[%c0_70, %c0_71] : memref<1x3xf32, #tpu.memory_space<vmem>>, vector<1x3xf32>
    %64 = arith.addf %62, %63 : vector<1x3xf32>
    %65 = vector.shape_cast %64 : vector<1x3xf32> to vector<1x1x3xf32>
    %c0_72 = arith.constant 0 : index
    %c0_73 = arith.constant 0 : index
    %c0_74 = arith.constant 0 : index
    %66 = vector.load %arg10[%c0_72, %c0_73, %c0_74] : memref<1x1x3xf32, #tpu.memory_space<vmem>>, vector<1x1x3xf32>
    tpu.vector_store %arg10[%c0_72, %c0_73, %c0_74], %65 {strides = array<i32>} : memref<1x1x3xf32, #tpu.memory_space<vmem>>, vector<1x1x3xf32>,
    return
  }
  func.func @transform_0(%arg0: i32) -> (i32, i32, i32) {
    %c0_i32 = arith.constant 0 : i32
    %c0_i32_0 = arith.constant 0 : i32
    %c0_i32_1 = arith.constant 0 : i32
    return %arg0, %c0_i32, %c0_i32_0 : i32, i32, i32
  }
  func.func @transform_1(%arg0: i32) -> (i32, i32) {
    %c0_i32 = arith.constant 0 : i32
    %c0_i32_0 = arith.constant 0 : i32
    %c0_i32_1 = arith.constant 0 : i32
    return %c0_i32, %c0_i32_0 : i32, i32
  }
  func.func @transform_2(%arg0: i32) -> (i32, i32) {
    %c0_i32 = arith.constant 0 : i32
    %c0_i32_0 = arith.constant 0 : i32
    %c0_i32_1 = arith.constant 0 : i32
    return %c0_i32, %c0_i32_0 : i32, i32
  }
  func.func @transform_3(%arg0: i32) -> (i32, i32) {
    %c0_i32 = arith.constant 0 : i32
    %c0_i32_0 = arith.constant 0 : i32
    %c0_i32_1 = arith.constant 0 : i32
    return %c0_i32, %c0_i32_0 : i32, i32
  }
  func.func @transform_4(%arg0: i32) -> (i32, i32) {
    %c0_i32 = arith.constant 0 : i32
    %c0_i32_0 = arith.constant 0 : i32
    %c0_i32_1 = arith.constant 0 : i32
    return %c0_i32, %c0_i32_0 : i32, i32
  }
  func.func @transform_5(%arg0: i32) -> (i32, i32) {
    %c0_i32 = arith.constant 0 : i32
    %c0_i32_0 = arith.constant 0 : i32
    %c0_i32_1 = arith.constant 0 : i32
    return %c0_i32, %c0_i32_0 : i32, i32
  }
  func.func @transform_6(%arg0: i32) -> (i32, i32) {
    %c0_i32 = arith.constant 0 : i32
    %c0_i32_0 = arith.constant 0 : i32
    %c0_i32_1 = arith.constant 0 : i32
    return %c0_i32, %c0_i32_0 : i32, i32
  }
  func.func @transform_7(%arg0: i32) -> (i32, i32) {
    %c0_i32 = arith.constant 0 : i32
    %c0_i32_0 = arith.constant 0 : i32
    %c0_i32_1 = arith.constant 0 : i32
    return %c0_i32, %c0_i32_0 : i32, i32
  }
  func.func @transform_8(%arg0: i32) -> (i32, i32) {
    %c0_i32 = arith.constant 0 : i32
    %c0_i32_0 = arith.constant 0 : i32
    %c0_i32_1 = arith.constant 0 : i32
    return %c0_i32, %c0_i32_0 : i32, i32
  }
  func.func @transform_9(%arg0: i32) -> (i32, i32, i32) {
    %c0_i32 = arith.constant 0 : i32
    %c0_i32_0 = arith.constant 0 : i32
    %c0_i32_1 = arith.constant 0 : i32
    return %arg0, %c0_i32, %c0_i32_0 : i32, i32, i32
  }
}

</mosaic_0001>

<bundles_post_ra>
// kernel: tpu_custom_call.1
= control target key start
LH: loop header
LB: loop body
LE: loop exit
PB: predicated region body
PF: predicated region fallthrough
CT: control target
= control target key end

     0   :  { %s3241_s0 = inlined_call_operand.vmem [shape: bf16[2,16,128], index: 0, kind: input, shape index: {}]   ;;  %s3242_s1 = inlined_call_operand.vmem [shape: bf16[128,128], index: 1, kind: input, shape index: {}]   ;;  %s3243_s2 = inlined_call_operand.vmem [shape: f32[1,128], index: 2, kind: input, shape index: {}]   ;;  %s3244_s3 = inlined_call_operand.hbm [shape: bf16[640,256], index: 3, kind: input, shape index: {}]   ;;  %s3245_s4 = inlined_call_operand.vmem [shape: f32[1,256], index: 4, kind: input, shape index: {}]   ;;  %s3246_s5 = inlined_call_operand.hbm [shape: bf16[768,128], index: 5, kind: input, shape index: {}]   ;;  %s3247_s6 = inlined_call_operand.vmem [shape: f32[1,128], index: 6, kind: input, shape index: {}]   ;;  %s3248_s7 = inlined_call_operand.vmem [shape: f32[128,3], index: 7, kind: input, shape index: {}]   ;;  %s3249_s8 = inlined_call_operand.vmem [shape: f32[1,3], index: 8, kind: input, shape index: {}]   ;;  %s3250_s9 = inlined_call_operand.hbm [shape: f32[2,1,3], index: 9, kind: output, shape index: {}]  }
   0x1   :  { %3251 = sst [smem:[#allocation13_spill]] %s3244_s3 }
   0x2   :  { %14 = vsyncpa [#allocation5], 0 }
   0x3   :  { %15 = vsyncpa [#allocation8], 0 }
   0x4   :  { %16 = vsyncpa [#allocation6], 0 }
   0x5   :  { %18 = vsyncpa [#allocation6 + $0x1], 0  ;;  %s2925_s30 = smov 0   ;;  %s2927_s10 = smov 0  }
   0x6   :  { %s2929_s11 = smov 0   ;;  %s2931_s12 = smov 0  }
   0x7 LB: > { %s2946_s13 = sadd.s32 4294967295, %s2866_s12   ;;  %s1915_s14 = sadd.s32 4294967294, %s2866_s12   ;;  %s2866_s12 = sphi %s2931_s12, %s3275_s12   ;;  %s2862_s11 = sphi %s2929_s11, %s3274_s11   ;;  %s2858_s10 = sphi %s2927_s10, %s3273_s10   ;;  %s2854_s30 = sphi %s2925_s30, %s3272_s30  }
   0x8   : > { %s2950_s15 = sadd.s32 1, %s2866_s12   ;;  %s225_s16 = sadd.s32 1, %s2862_s11 }
   0x9   : > { %s222_s17 = ssub.s32 %s2866_s12, %s2950_s15  ;;  %p235_p0 = scmp.ne.s32.totalorder %s2862_s11, %s2858_s10 }
   0xa   : > { %p223_p1 = scmp.eq.s32.totalorder %s222_s17, 0  ;;  %p236_p2 = scmp.eq.s32.totalorder %s2946_s13, 1 }
   0xb   : > { %p241_p3 = scmp.ne.s32.totalorder %s2858_s10, %s2854_s30  ;;  %p242_p4 = scmp.eq.s32.totalorder %s1915_s14, 1 }
   0xc   : > { %s2961_s18 = scalar_select %p223_p1, %s2862_s11, %s225_s16  }
   0xd   : > { %p2963_p5 = por %p236_p2, %p235_p0  ;;  %p2967_p6 = por %p242_p4, %p241_p3 }
   0xe   : > { %p1916_p7 = scmp.ge.s32.totalorder %s2866_s12, 1  ;;  %p249_p8 = scmp.lt.s32.totalorder %s2866_s12, 3 }
   0xf   : > { %p2690_p9 = scmp.eq.s32.totalorder %s2946_s13, 0  ;;  %s3255_s3 = sld [smem:[#allocation13_spill]] }
  0x10   : > { %p2974_p10 = pnand %p1916_p7, %p249_p8  ;;  %s2868_s25 = smov [#allocation4]  }
  0x11   : > { %s268_s26 = sshll.u32 %s2868_s25, 4  ;;  %s283_s29 = sshll.u32 %s3246_s5, 4  ;;  %s269_s26 = int_to_ptr.vmem [resolvable:$true] %s268_s26  ;;  %s284_s29 = int_to_ptr.hbm [resolvable:$true] %s283_s29 }
  0x12   : > { %p2679_p11 = pneg %p2974_p10  ;;  %s2869_s14 = smov 128  }
  0x13   : > { %s2870_s16 = smov 8   ;;  %s2871_s17 = smov [#allocation7]  }
  0x14   : > { %p2680_p12 = pnand %p2690_p9, %p2679_p11  ;;  %s285_s22 = sshll.u32 %s2871_s17, 4  ;;  %s286_s22 = int_to_ptr.vmem [resolvable:$true] %s285_s22 }
  0x15   : > { %s266_s24 = sshll.u32 %s3255_s3, 4  ;;  %s2872_s23 = smov 64   ;;  %s267_s24 = int_to_ptr.hbm [resolvable:$true] %s266_s24 }
  0x16   : > { %2682 = dma.hbm_to_vmem [thread:$0]  (!%p2680_p12), %s267_s24, 10240, %s269_s26, [#allocation5], %s2869_s14, %s2869_s14, %s2870_s16  }
  0x17   : > { %s2873_s3 = smov 4   ;;  %318 = sbr.rel (%p2974_p10) target bundleno = 725 (0x2d5), region = 56 }
  0x18   : > { %2685 = dma.hbm_to_vmem [thread:$0]  (!%p2680_p12), %s284_s29, 6144, %s286_s22, [#allocation8], %s2872_s23, %s2872_s23, %s2873_s3  }
  0x1c   : > { %2841 = dma.done.wait (%p2690_p9), [#allocation5], 10240  }
  0x1d   : > { %2843 = vsyncadd (%p2690_p9), [#allocation5], 4294957056 }
  0x1e   : > { %2845 = dma.done.wait (%p2690_p9), [#allocation8], 6144  }
  0x1f   : > { %2847 = vsyncadd (%p2690_p9), [#allocation8], 4294961152  ;;  %v2529_v0 = vld [vmem:[%s3242_s1 + $0x38] sm:$0xff]  ;;  %v2528_v1 = vld [vmem:[%s3242_s1 + $0x30] sm:$0xff]  ;;  %p359_p13 = scmp.lt.s32.totalorder %s2946_s13, 1  ;;  %vm462_vm0 = vcmask 1040384   ;;  %s1834_s17 = scalar_lea.hbm %s3250_s9, %s2946_s13 }
  0x20   : > { %441 = vmatpush.bf16.msra.mxu0 %v2529_v0  ;;  %v2040_v2 = vld [vmem:[#allocation4 + $0x70] sm:$0xf]  ;;  %v2550_v3 = vld [vmem:[#allocation4 + $0x74] sm:$0xf0]  ;;  %v2032_v4 = vld [vmem:[#allocation4 + $0x60] sm:$0xf] }
  0x21   : > { %v2041_v5 = vor.u32 %v2550_v3, %v2040_v2  ;;  %v2548_v6 = vld [vmem:[#allocation4 + $0x64] sm:$0xf0]  ;;  %v2104_v7 = vld [vmem:[#allocation4 + $0xf0] sm:$0xf]  ;;  %v2566_v8 = vld [vmem:[#allocation4 + $0xf4] sm:$0xf0] }
  0x22   : > { %v2527_v9 = vld [vmem:[%s3242_s1 + $0x28] sm:$0xff]  ;;  %v2105_v10 = vor.u32 %v2566_v8, %v2104_v7  ;;  %v2096_v11 = vld [vmem:[#allocation4 + $0xe0] sm:$0xf]  ;;  %v2033_v12 = vor.u32 %v2548_v6, %v2032_v4  ;;  %v2564_v13 = vld [vmem:[#allocation4 + $0xe4] sm:$0xf0]  ;;  %s3020_s23 = scalar_select %p359_p13, %s2946_s13, 1 }
  0x23   : > { %1063 = vmatpush.bf16.msra.mxu1 %v2041_v5  ;;  %v2168_v14 = vld [vmem:[#allocation4 + $0x170] sm:$0xf]  ;;  %v2582_v15 = vld [vmem:[#allocation4 + $0x174] sm:$0xf0]  ;;  %v2097_v18 = vor.u32 %v2564_v13, %v2096_v11  ;;  %v2160_v22 = vld [vmem:[#allocation4 + $0x160] sm:$0xf] }
  0x24   : > { %442 = vmatpush.bf16.msra.mxu0 %v2528_v1  ;;  %1077 = vmatpush.bf16.msra.mxu2 %v2105_v10  ;;  %v2024_v16 = vld [vmem:[#allocation4 + $0x50] sm:$0xf]  ;;  %v2546_v17 = vld [vmem:[#allocation4 + $0x54] sm:$0xf0]  ;;  %v2169_v19 = vor.u32 %v2582_v15, %v2168_v14  ;;  %v2580_v23 = vld [vmem:[#allocation4 + $0x164] sm:$0xf0] }
  0x25   : > { %v2088_v20 = vld [vmem:[#allocation4 + $0xd0] sm:$0xf]  ;;  %v2562_v21 = vld [vmem:[#allocation4 + $0xd4] sm:$0xf0]  ;;  %v2161_v24 = vor.u32 %v2580_v23, %v2160_v22  ;;  %v2526_v25 = vld [vmem:[%s3242_s1 + $0x20] sm:$0xff]  ;;  %v2025_v26 = vor.u32 %v2546_v17, %v2024_v16  ;;  %s2520_s3 = sshll.u32 %s3020_s23, 3 }
  0x26   : > { %1091 = vmatpush.bf16.msra.mxu3 %v2169_v19  ;;  %v2152_v27 = vld [vmem:[#allocation4 + $0x150] sm:$0xf]  ;;  %v2578_v28 = vld [vmem:[#allocation4 + $0x154] sm:$0xf0]  ;;  %v2016_v29 = vld [vmem:[#allocation4 + $0x40] sm:$0xf]  ;;  %v2089_v31 = vor.u32 %v2562_v21, %v2088_v20  ;;  %s363_s29 = scalar_lea.vmem %s3241_s0, %s2520_s3 }
  0x27   : > { %1064 = vmatpush.bf16.msra.mxu1 %v2033_v12  ;;  %v2544_v30 = vld [vmem:[#allocation4 + $0x44] sm:$0xf0]  ;;  %v2080_v32 = vld [vmem:[#allocation4 + $0xc0] sm:$0xf]  ;;  %v2153_v34 = vor.u32 %v2578_v28, %v2152_v27  ;;  %v2008_v39 = vld [vmem:[#allocation4 + $0x30] sm:$0xf] }
  0x28   : > { %443 = vmatpush.bf16.msra.mxu0 %v2527_v9  ;;  %1078 = vmatpush.bf16.msra.mxu2 %v2097_v18  ;;  %v2560_v33 = vld [vmem:[#allocation4 + $0xc4] sm:$0xf0]  ;;  %v2525_v35 = vld [vmem:[%s3242_s1 + $0x18] sm:$0xff]  ;;  %v2017_v36 = vor.u32 %v2544_v30, %v2016_v29  ;;  %v2542_v40 = vld [vmem:[#allocation4 + $0x34] sm:$0xf0]  ;;  %vm463_vm3 = vcmask 1044484  }
  0x29   : > { %v2144_v37 = vld [vmem:[#allocation4 + $0x140] sm:$0xf]  ;;  %v2576_v38 = vld [vmem:[#allocation4 + $0x144] sm:$0xf0]  ;;  %v2081_v41 = vor.u32 %v2560_v33, %v2080_v32  ;;  %v2072_v42 = vld [vmem:[#allocation4 + $0xb0] sm:$0xf]  ;;  %v2009_v46 = vor.u32 %v2542_v40, %v2008_v39 }
  0x2a   : > { %1092 = vmatpush.bf16.msra.mxu3 %v2161_v24  ;;  %v2558_v43 = vld [vmem:[#allocation4 + $0xb4] sm:$0xf0]  ;;  %v2145_v44 = vor.u32 %v2576_v38, %v2144_v37  ;;  %v2136_v47 = vld [vmem:[#allocation4 + $0x130] sm:$0xf]  ;;  %v2000_v49 = vld [vmem:[#allocation4 + $0x20] sm:$0xf] }
  0x2b   : > { %1065 = vmatpush.bf16.msra.mxu1 %v2025_v26  ;;  %v2524_v45 = vld [vmem:[%s3242_s1 + $0x10] sm:$0xff]  ;;  %v2540_v50 = vld [vmem:[#allocation4 + $0x24] sm:$0xf0]  ;;  %v2073_v51 = vor.u32 %v2558_v43, %v2072_v42  ;;  %v2064_v52 = vld [vmem:[#allocation4 + $0xa0] sm:$0xf]  ;;  %vm498_vm7 = vcmask 1043456  }
  0x2c   : > { %444 = vmatpush.bf16.msra.mxu0 %v2526_v25  ;;  %1079 = vmatpush.bf16.msra.mxu2 %v2089_v31  ;;  %v2574_v48 = vld [vmem:[#allocation4 + $0x134] sm:$0xf0]  ;;  %v2556_v53 = vld [vmem:[#allocation4 + $0xa4] sm:$0xf0]  ;;  %v2523_v55 = vld [vmem:[%s3242_s1 + $0x8] sm:$0xff]  ;;  %v2001_v56 = vor.u32 %v2540_v50, %v2000_v49  ;;  %v2874_v49 = vmov 0  }
  0x2d   : > { %v2137_v54 = vor.u32 %v2574_v48, %v2136_v47  ;;  %v1992_v57 = vld [vmem:[#allocation4 + $0x10] sm:$0xf]  ;;  %v2538_v58 = vld [vmem:[#allocation4 + $0x14] sm:$0xf0]  ;;  %v2065_v59 = vor.u32 %v2556_v53, %v2064_v52  ;;  %v2522_v0 = vld [vmem:[%s3242_s1] sm:$0xff]  ;;  %vm532_vm10 = vcmask 1042432  }
  0x2e   : > { %1093 = vmatpush.bf16.msra.mxu3 %v2153_v34  ;;  %v2056_v60 = vld [vmem:[#allocation4 + $0x90] sm:$0xf]  ;;  %v2554_v61 = vld [vmem:[#allocation4 + $0x94] sm:$0xf0]  ;;  %v1993_v1 = vor.u32 %v2538_v58, %v1992_v57  ;;  %v1984_v2 = vld [vmem:[#allocation4] sm:$0xf] }
  0x2f   : > { %1066 = vmatpush.bf16.msra.mxu1 %v2017_v36  ;;  %v2232_v62 = vld [vmem:[#allocation4 + $0x1f0] sm:$0xf]  ;;  %v2598_v63 = vld [vmem:[#allocation4 + $0x1f4] sm:$0xf0]  ;;  %v2536_v3 = vld [vmem:[#allocation4 + $0x4] sm:$0xf0]  ;;  %v2057_v4 = vor.u32 %v2554_v61, %v2056_v60 }
  0x30   : > { %445 = vmatpush.bf16.msra.mxu0 %v2525_v35  ;;  %1080 = vmatpush.bf16.msra.mxu2 %v2081_v41  ;;  %v2233_v5 = vor.u32 %v2598_v63, %v2232_v62  ;;  %v2521_v6 = vld [vmem:[%s363_s29] sm:$0xff]  ;;  %v1985_v7 = vor.u32 %v2536_v3, %v1984_v2  ;;  %v2296_v8 = vld [vmem:[#allocation4 + $0x270] sm:$0xf]  ;;  %v2614_v9 = vld [vmem:[#allocation4 + $0x274] sm:$0xf0]  ;;  %vm533_vm11 = vcmask 1046532  }
  0x31   : > { %v2297_v10 = vor.u32 %v2614_v9, %v2296_v8  ;;  %v2128_v11 = vld [vmem:[#allocation4 + $0x120] sm:$0xf]  ;;  %v2572_v12 = vld [vmem:[#allocation4 + $0x124] sm:$0xf0]  ;;  %vm473_vm1 = vsmask.f32 256  ;;  %vm464_vm14 = vmor %vm462_vm0, %vm463_vm3 }
  0x32   : > { %1094 = vmatpush.bf16.msra.mxu3 %v2145_v44  ;;  %v2129_v13 = vor.u32 %v2572_v12, %v2128_v11  ;;  %v2048_v14 = vld [vmem:[#allocation4 + $0x80] sm:$0xf]  ;;  %v2552_v15 = vld [vmem:[#allocation4 + $0x84] sm:$0xf0]  ;;  %v2549_v23 = vld [vmem:[#allocation4 + $0x74] sm:$0xf] }
  0x33   : > { %1067 = vmatpush.bf16.msra.mxu1 %v2009_v46  ;;  %v2224_v16 = vld [vmem:[#allocation4 + $0x1e0] sm:$0xf]  ;;  %v2049_v17 = vor.u32 %v2552_v15, %v2048_v14  ;;  %v2596_v18 = vld [vmem:[#allocation4 + $0x1e4] sm:$0xf0]  ;;  %vm3034_vm2 = vmand %vm462_vm0, %vm473_vm1  ;;  %459 = vst [vmem:[#allocation2] sm:$0x1] %v2874_v49 }
  0x34   : > { %446 = vmatpush.bf16.msra.mxu0 %v2524_v45  ;;  %1081 = vmatpush.bf16.msra.mxu2 %v2073_v51  ;;  %v2288_v19 = vld [vmem:[#allocation4 + $0x260] sm:$0xf]  ;;  %v2612_v20 = vld [vmem:[#allocation4 + $0x264] sm:$0xf0]  ;;  %v2225_v21 = vor.u32 %v2596_v18, %v2224_v16  ;;  %v475_v25 = vld [vmem:[#allocation2 + $0x4] sm:$0x1] }
  0x35   : > { %v2289_v22 = vor.u32 %v2612_v20, %v2288_v19  ;;  %v2042_v26 = vld [vmem:[#allocation4 + $0x78] sm:$0xf0]  ;;  %v476_v27 = vsel %vm3034_vm2, 0, %v475_v25  ;;  %v2120_v29 = vld [vmem:[#allocation4 + $0x110] sm:$0xf]  ;;  %s357_s29 = sand.u32 1, %s2858_s10  }
  0x36   : > { %1095 = vmatpush.bf16.msra.mxu3 %v2137_v54  ;;  %v2045_v28 = vor.u32 %v2549_v23, %v2042_v26  ;;  %v2570_v30 = vld [vmem:[#allocation4 + $0x114] sm:$0xf0]  ;;  %477 = vst [vmem:[#allocation2 + $0x4] sm:$0x1] %v476_v27  ;;  %v2216_v32 = vld [vmem:[#allocation4 + $0x1d0] sm:$0xf] }
  0x37   : > { %1068 = vmatpush.bf16.msra.mxu1 %v2001_v56  ;;  %v2121_v31 = vor.u32 %v2570_v30, %v2120_v29  ;;  %v2594_v33 = vld [vmem:[#allocation4 + $0x1d4] sm:$0xf0]  ;;  %v2280_v35 = vld [vmem:[#allocation4 + $0x250] sm:$0xf]  ;;  %v2547_v37 = vld [vmem:[#allocation4 + $0x64] sm:$0xf] }
  0x38   : > { %447 = vmatpush.bf16.msra.mxu0 %v2523_v55  ;;  %1082 = vmatpush.bf16.msra.mxu2 %v2065_v59  ;;  %v2217_v34 = vor.u32 %v2594_v33, %v2216_v32  ;;  %v2610_v36 = vld [vmem:[#allocation4 + $0x254] sm:$0xf0]  ;;  %v2034_v39 = vld [vmem:[#allocation4 + $0x68] sm:$0xf0]  ;;  %v2112_v40 = vld [vmem:[#allocation4 + $0x100] sm:$0xf] }
  0x39   : > { %v2281_v38 = vor.u32 %v2610_v36, %v2280_v35  ;;  %v2568_v41 = vld [vmem:[#allocation4 + $0x104] sm:$0xf0]  ;;  %v2037_v42 = vor.u32 %v2547_v37, %v2034_v39  ;;  %v2565_v44 = vld [vmem:[#allocation4 + $0xf4] sm:$0xf]  ;;  %v2106_v45 = vld [vmem:[#allocation4 + $0xf8] sm:$0xf0] }
  0x3a   : > { %1096 = vmatpush.bf16.msra.mxu3 %v2129_v13  ;;  %v2113_v43 = vor.u32 %v2568_v41, %v2112_v40  ;;  %v2109_v46 = vor.u32 %v2565_v44, %v2106_v45  ;;  %v2208_v47 = vld [vmem:[#allocation4 + $0x1c0] sm:$0xf]  ;;  %v2592_v48 = vld [vmem:[#allocation4 + $0x1c4] sm:$0xf0]  ;;  %v2545_v53 = vld [vmem:[#allocation4 + $0x54] sm:$0xf] }
  0x3b   : > { %1069 = vmatpush.bf16.msra.mxu1 %v1993_v1  ;;  %v2209_v50 = vor.u32 %v2592_v48, %v2208_v47  ;;  %v2272_v51 = vld [vmem:[#allocation4 + $0x240] sm:$0xf]  ;;  %v2608_v52 = vld [vmem:[#allocation4 + $0x244] sm:$0xf0]  ;;  %v2026_v55 = vld [vmem:[#allocation4 + $0x58] sm:$0xf0] }
  0x3c   : > { %448 = vmatpush.bf16.msra.mxu0 %v2522_v0  ;;  %1083 = vmatpush.bf16.msra.mxu2 %v2057_v4  ;;  %v2273_v54 = vor.u32 %v2608_v52, %v2272_v51  ;;  %v2563_v56 = vld [vmem:[#allocation4 + $0xe4] sm:$0xf]  ;;  %v2029_v57 = vor.u32 %v2545_v53, %v2026_v55  ;;  %v2098_v58 = vld [vmem:[#allocation4 + $0xe8] sm:$0xf0]  ;;  %v2200_v59 = vld [vmem:[#allocation4 + $0x1b0] sm:$0xf] }
  0x3d   : > { %544 = vst [vmem:[#allocation2 + $0x24] sm:$0x8] %v2874_v49  ;;  %v2101_v60 = vor.u32 %v2563_v56, %v2098_v58  ;;  %v2590_v61 = vld [vmem:[#allocation4 + $0x1b4] sm:$0xf0]  ;;  %v2264_v62 = vld [vmem:[#allocation4 + $0x230] sm:$0xf] }
  0x3e   : > { %1097 = vmatpush.bf16.msra.mxu3 %v2121_v31  ;;  %v2201_v63 = vor.u32 %v2590_v61, %v2200_v59  ;;  %v2606_v0 = vld [vmem:[#allocation4 + $0x234] sm:$0xf0]  ;;  %v2543_v1 = vld [vmem:[#allocation4 + $0x44] sm:$0xf]  ;;  %v2018_v3 = vld [vmem:[#allocation4 + $0x48] sm:$0xf0] }
  0x3f   : > { %449 = vmatmul.bf16.vlgmr.msra.gmra.mxu0 %v2521_v6  ;;  %1070 = vmatpush.bf16.msra.mxu1 %v1985_v7  ;;  %v2265_v2 = vor.u32 %v2606_v0, %v2264_v62  ;;  %v2021_v4 = vor.u32 %v2543_v1, %v2018_v3  ;;  %v2090_v6 = vld [vmem:[#allocation4 + $0xd8] sm:$0xf0]  ;;  %v2192_v8 = vld [vmem:[#allocation4 + $0x1a0] sm:$0xf]  ;;  %v2588_v9 = vld [vmem:[#allocation4 + $0x1a4] sm:$0xf0] }
  0x40   : > { %1105 = vmatpush.bf16.msrb.mxu0 %v2233_v5  ;;  %1084 = vmatpush.bf16.msra.mxu2 %v2049_v17  ;;  %v2561_v5 = vld [vmem:[#allocation4 + $0xd4] sm:$0xf]  ;;  %v2256_v11 = vld [vmem:[#allocation4 + $0x220] sm:$0xf]  ;;  %v2604_v12 = vld [vmem:[#allocation4 + $0x224] sm:$0xf0] }
  0x41   : > { %v2093_v7 = vor.u32 %v2561_v5, %v2090_v6  ;;  %v2541_v13 = vld [vmem:[#allocation4 + $0x34] sm:$0xf]  ;;  %v2257_v14 = vor.u32 %v2604_v12, %v2256_v11  ;;  %v2010_v15 = vld [vmem:[#allocation4 + $0x38] sm:$0xf0]  ;;  %v2559_v16 = vld [vmem:[#allocation4 + $0xc4] sm:$0xf] }
  0x42   : > { %1098 = vmatpush.bf16.msra.mxu3 %v2113_v43  ;;  %v2082_v17 = vld [vmem:[#allocation4 + $0xc8] sm:$0xf0]  ;;  %v2013_v18 = vor.u32 %v2541_v13, %v2010_v15  ;;  %v2184_v20 = vld [vmem:[#allocation4 + $0x190] sm:$0xf]  ;;  %v2602_v23 = vld [vmem:[#allocation4 + $0x214] sm:$0xf0] }
  0x43   : > { %1119 = vmatpush.bf16.msrb.mxu1 %v2297_v10  ;;  %v2193_v10 = vor.u32 %v2588_v9, %v2192_v8  ;;  %v2085_v19 = vor.u32 %v2559_v16, %v2082_v17  ;;  %v2539_v27 = vld [vmem:[#allocation4 + $0x24] sm:$0xf]  ;;  %v2557_v29 = vld [vmem:[#allocation4 + $0xb4] sm:$0xf]  ;;  %v3043_v30 = vld [vmem:[%s3243_s2] ss:$0 sm:$0xff] }
  0x44   : > { %1106 = vmatpush.bf16.msrb.mxu0 %v2225_v21  ;;  %1133 = vmatpush.bf16.msrb.mxu2 %v2045_v28  ;;  %v2586_v21 = vld [vmem:[#allocation4 + $0x194] sm:$0xf0]  ;;  %v2002_v28 = vld [vmem:[#allocation4 + $0x28] sm:$0xf0]  ;;  %v2074_v32 = vld [vmem:[#allocation4 + $0xb8] sm:$0xf0] }
  0x45   : > { %v2185_v25 = vor.u32 %v2586_v21, %v2184_v20  ;;  %v2005_v31 = vor.u32 %v2539_v27, %v2002_v28  ;;  %v2176_v33 = vld [vmem:[#allocation4 + $0x180] sm:$0xf]  ;;  %v2077_v35 = vor.u32 %v2557_v29, %v2074_v32  ;;  %v2537_v39 = vld [vmem:[#allocation4 + $0x14] sm:$0xf]  ;;  %v1994_v41 = vld [vmem:[#allocation4 + $0x18] sm:$0xf0] }
  0x46   : > { %1147 = vmatpush.bf16.msrb.mxu3 %v2109_v46  ;;  %v2240_v37 = vld [vmem:[#allocation4 + $0x200] sm:$0xf]  ;;  %v2170_v43 = vld [vmem:[#allocation4 + $0x178] sm:$0xf0]  ;;  %v1997_v44 = vor.u32 %v2537_v39, %v1994_v41  ;;  %v2555_v46 = vld [vmem:[#allocation4 + $0xa4] sm:$0xf] }
  0x47   : > { %1120 = vmatpush.bf16.msrb.mxu1 %v2289_v22  ;;  %v2248_v22 = vld [vmem:[#allocation4 + $0x210] sm:$0xf]  ;;  %v2066_v47 = vld [vmem:[#allocation4 + $0xa8] sm:$0xf0]  ;;  %v2579_v52 = vld [vmem:[#allocation4 + $0x164] sm:$0xf] }
  0x48   : > { %1107 = vmatpush.bf16.msrb.mxu0 %v2217_v34  ;;  %1134 = vmatpush.bf16.msrb.mxu2 %v2037_v42  ;;  %v2249_v26 = vor.u32 %v2602_v23, %v2248_v22  ;;  %v2584_v34 = vld [vmem:[#allocation4 + $0x184] sm:$0xf0]  ;;  %v2581_v42 = vld [vmem:[#allocation4 + $0x174] sm:$0xf]  ;;  %v2069_v49 = vor.u32 %v2555_v46, %v2066_v47  ;;  %v1986_v51 = vld [vmem:[#allocation4 + $0x8] sm:$0xf0] }
  0x49   : > { %v2177_v36 = vor.u32 %v2584_v34, %v2176_v33  ;;  %v2173_v45 = vor.u32 %v2581_v42, %v2170_v43  ;;  %v2162_v55 = vld [vmem:[#allocation4 + $0x168] sm:$0xf0]  ;;  %vm1209_vm4 = vsmask.f32 4352  ;;  %v1212_v56 = vld [vmem:[#allocation3] sm:$0x11] }
  0x4a   : > { %1148 = vmatpush.bf16.msrb.mxu3 %v2101_v60  ;;  %vm1210_vm5 = vmand %vm463_vm3, %vm1209_vm4  ;;  %v2553_v59 = vld [vmem:[#allocation4 + $0x94] sm:$0xf]  ;;  %v2058_v60 = vld [vmem:[#allocation4 + $0x98] sm:$0xf0]  ;;  %vm499_vm8 = vsmask.f32 7938 }
  0x4b   : > { %1121 = vmatpush.bf16.msrb.mxu1 %v2281_v38  ;;  %v2600_v38 = vld [vmem:[#allocation4 + $0x204] sm:$0xf0]  ;;  %vm1211_vm6 = vmor %vm1210_vm5, %vm3034_vm2  ;;  %v2577_v61 = vld [vmem:[#allocation4 + $0x154] sm:$0xf]  ;;  %v2061_v0 = vor.u32 %v2553_v59, %v2058_v60  ;;  %vm507_vm12 = vsmask.f32 3328 }
  0x4c   : > { %1108 = vmatpush.bf16.msrb.mxu0 %v2209_v50  ;;  %1135 = vmatpush.bf16.msrb.mxu2 %v2029_v57  ;;  %v2241_v40 = vor.u32 %v2600_v38, %v2240_v37  ;;  %v2535_v50 = vld [vmem:[#allocation4 + $0x4] sm:$0xf]  ;;  %v2165_v57 = vor.u32 %v2579_v52, %v2162_v55  ;;  %v2154_v1 = vld [vmem:[#allocation4 + $0x158] sm:$0xf0]  ;;  %vm3058_vm9 = vmand %vm498_vm7, %vm499_vm8  ;;  %vm508_vm13 = vsmask.f32 7440 }
  0x4d   : > { %v2551_v6 = vld [vmem:[#allocation4 + $0x84] sm:$0xf]  ;;  %v501_v12 = vld [vmem:[#allocation2 + $0x4] sm:$0xf]  ;;  %v2573_v20 = vld [vmem:[#allocation4 + $0x134] sm:$0xf] }
  0x4e   : > { %1149 = vmatpush.bf16.msrb.mxu3 %v2093_v7  ;;  %v2050_v7 = vld [vmem:[#allocation4 + $0x88] sm:$0xf0]  ;;  %v2575_v15 = vld [vmem:[#allocation4 + $0x144] sm:$0xf]  ;;  %v2138_v23 = vld [vmem:[#allocation4 + $0x138] sm:$0xf0] }
  0x4f   : > { %1122 = vmatpush.bf16.msrb.mxu1 %v2273_v54  ;;  %v1989_v54 = vor.u32 %v2535_v50, %v1986_v51  ;;  %v2146_v16 = vld [vmem:[#allocation4 + $0x148] sm:$0xf0]  ;;  %vm478_vm15 = vsmask.f32 4368  ;;  %vm534_vm2 = vmor %vm532_vm10, %vm533_vm11  ;;  %v2597_v51 = vld [vmem:[#allocation4 + $0x1f4] sm:$0xf] }
  0x50   : > { %1109 = vmatpush.bf16.msrb.mxu0 %v2201_v63  ;;  %1136 = vmatpush.bf16.msrb.mxu2 %v2021_v4  ;;  %v1213_v63 = vsel %vm1211_vm6, 0, %v1212_v56  ;;  %vm3072_vm4 = vmor %vm507_vm12, %vm508_vm13  ;;  %v2234_v52 = vld [vmem:[#allocation4 + $0x1f8] sm:$0xf0]  ;;  %vm527_vm5 = vsmask.f32 7950  ;;  %s358_s24 = scalar_lea.vmem [#allocation9], %s357_s29 }
  0x51   : > { %1214 = vst [vmem:[#allocation3] sm:$0x11] %v1213_v63  ;;  %vm3078_vm0 = vmor %vm473_vm1, %vm478_vm15  ;;  %v2122_v56 = vld [vmem:[#allocation4 + $0x118] sm:$0xf0]  ;;  %vm526_vm1 = vcmask 1043459   ;;  %vm1261_vm15 = vcmask 1047559  }
  0x52   : > { %1150 = vmatpush.bf16.msrb.mxu3 %v2085_v19  ;;  %vm3087_vm3 = vmand %vm498_vm7, %vm507_vm12  ;;  %v2114_v63 = vld [vmem:[#allocation4 + $0x108] sm:$0xf0]  ;;  %vm1233_vm7 = vcmask 1047556   ;;  %vm1234_vm8 = vsmask.f32 7954  ;;  %s1836_s25 = sshll.u32 %s358_s24, 4  ;;  %s1837_s25 = int_to_ptr.vmem [resolvable:$true] %s1836_s25 }
  0x53   : > { %1123 = vmatpush.bf16.msrb.mxu1 %v2265_v2  ;;  %v2157_v2 = vor.u32 %v2577_v61, %v2154_v1  ;;  %vm3100_vm6 = vmand %vm526_vm1, %vm527_vm5  ;;  %vm1255_vm12 = vsmask.f32 7424  ;;  %s1838_s3 = sshll.u32 %s1834_s17, 4  ;;  %s1826_s21 = scalar_lea.sflag [#allocation6], %s357_s29  ;;  %s1839_s3 = int_to_ptr.hbm [resolvable:$true] %s1838_s3 }
  0x54   : > { %1110 = vmatpush.bf16.msrb.mxu0 %v2193_v10  ;;  %1137 = vmatpush.bf16.msrb.mxu2 %v2013_v18  ;;  %v2149_v18 = vor.u32 %v2575_v15, %v2146_v16  ;;  %v2218_v16 = vld [vmem:[#allocation4 + $0x1d8] sm:$0xf0]  ;;  %vm3132_vm10 = vmand %vm1233_vm7, %vm1234_vm8  ;;  %s2810_s26 = sshra.s32 %s1839_s3, 4  ;;  %s2816_s14 = scalar_lea.hbm %s3250_s9, 2  ;;  %s2811_s26 = int_to_ptr.hbm [resolvable:$true] %s2810_s26 }
  0x55   : > { %vm1236_vm11 = vmor %vm3132_vm10, %vm3058_vm9  ;;  %s2812_s27 = scalar_lea.hbm %s2811_s26, 1  ;;  %p2817_p3 = scmp.lt.s32.totalorder %s2811_s26, %s3250_s9 }
  0x56   : > { %1151 = vmatpush.bf16.msrb.mxu3 %v2077_v35  ;;  %v2571_v35 = vld [vmem:[#allocation4 + $0x124] sm:$0xf]  ;;  %p2813_p0 = scmp.ne.s32.totalorder %s2811_s26, %s2812_s27  ;;  %p2818_p4 = scmp.lt.s32.totalorder %s2816_s14, %s2812_s27 }
  0x57   : > { %1124 = vmatpush.bf16.msrb.mxu1 %v2257_v14  ;;  %v2053_v14 = vor.u32 %v2551_v6, %v2050_v7  ;;  %v2613_v6 = vld [vmem:[#allocation4 + $0x274] sm:$0xf]  ;;  %v2298_v7 = vld [vmem:[#allocation4 + $0x278] sm:$0xf0] }
  0x58   : > { %1111 = vmatpush.bf16.msrb.mxu0 %v2185_v25  ;;  %1138 = vmatpush.bf16.msrb.mxu2 %v2005_v31  ;;  %p2814_p1 = pnand %p2813_p0, %p2963_p5  ;;  %p2819_p7 = por %p2818_p4, %p2817_p3 }
  0x5a   : > { %1152 = vmatpush.bf16.msrb.mxu3 %v2069_v49  ;;  %v523_v49 = vld [vmem:[#allocation2 + $0x20] sm:$0xf]  ;;  %p2815_p2 = pneg %p2814_p1 }
  0x5b   : > { %1125 = vmatpush.bf16.msrb.mxu1 %v2249_v26  ;;  %v2141_v26 = vor.u32 %v2573_v20, %v2138_v23  ;;  %v2591_v23 = vld [vmem:[#allocation4 + $0x1c4] sm:$0xf] }
  0x5c   : > { %1112 = vmatpush.bf16.msrb.mxu0 %v2177_v36  ;;  %1139 = vmatpush.bf16.msrb.mxu2 %v1997_v44  ;;  %v2130_v36 = vld [vmem:[#allocation4 + $0x128] sm:$0xf0]  ;;  %p2820_p8 = pnand %p2819_p7, %p2815_p2 }
  0x5d   : > { %v2133_v44 = vor.u32 %v2571_v35, %v2130_v36  ;;  %v2274_v36 = vld [vmem:[#allocation4 + $0x248] sm:$0xf0] }
  0x5e   : > { %1153 = vmatpush.bf16.msrb.mxu3 %v2061_v0 }
  0x5f   : > { %1126 = vmatpush.bf16.msrb.mxu1 %v2241_v40 }
  0x60   : > { %1161 = vmatpush.bf16.msra.mxu0 %v2173_v45  ;;  %1140 = vmatpush.bf16.msrb.mxu2 %v1989_v54 }
  0x62   : > { %1154 = vmatpush.bf16.msrb.mxu3 %v2053_v14  ;;  %v2593_v14 = vld [vmem:[#allocation4 + $0x1d4] sm:$0xf] }
  0x64   : > { %1162 = vmatpush.bf16.msra.mxu0 %v2165_v57 }
  0x68   : > { %1163 = vmatpush.bf16.msra.mxu0 %v2157_v2  ;;  %v2237_v2 = vor.u32 %v2597_v51, %v2234_v52  ;;  %v2585_v51 = vld [vmem:[#allocation4 + $0x194] sm:$0xf]  ;;  %v2186_v52 = vld [vmem:[#allocation4 + $0x198] sm:$0xf0] }
  0x6c   : > { %1164 = vmatpush.bf16.msra.mxu0 %v2149_v18  ;;  %v2290_v18 = vld [vmem:[#allocation4 + $0x268] sm:$0xf0] }
  0x70   : > { %1165 = vmatpush.bf16.msra.mxu0 %v2141_v26  ;;  %v2609_v26 = vld [vmem:[#allocation4 + $0x254] sm:$0xf] }
  0x74   : > { %1166 = vmatpush.bf16.msra.mxu0 %v2133_v44  ;;  %v2587_v44 = vld [vmem:[#allocation4 + $0x1a4] sm:$0xf] }
  0xbc   : > { %v450_v48 = vpop.f32.mrf.mxu0 }
  0xbd   : > { %v451_v53 = vadd.f32 %v3043_v30, %v450_v48 }
  0xbf   : > { %v455_v58 = vmax.f32 %v451_v53, 0.0  ;;  %v2569_v53 = vld [vmem:[#allocation4 + $0x114] sm:$0xf] }
  0xc0   : > { %v2125_v59 = vor.u32 %v2569_v53, %v2122_v56  ;;  %v2603_v53 = vld [vmem:[#allocation4 + $0x224] sm:$0xf] }
  0xc1   : > { %v3049_v62 = vpack.c.bf16 %v455_v58, %v455_v58 }
  0xc2   : > { %1167 = vmatpush.bf16.msra.mxu0 %v2125_v59  ;;  %v2601_v59 = vld [vmem:[#allocation4 + $0x214] sm:$0xf] }
  0xc3   : > { %v465_v3 = vrot.slane %v3049_v62, 7  ;;  %v481_v4 = vshrl.u32 %v3049_v62, 16  ;;  %v484_v24 = vshll.u32 %v3049_v62, 16  ;;  %505 = vst [vmem:[#allocation2 + $0x8] sm:$0xf] %v3049_v62  ;;  %v1961_v33 = vrot.slane %v3049_v62, 9 }
  0xc4   : > { %v452_v5 = vpop.f32.mrf.mxu0  ;;  %v2567_v62 = vld [vmem:[#allocation4 + $0x104] sm:$0xf] }
  0xc5   : > { %471 = vst [vmem:[#allocation2] sm:$0xe] %v465_v3  ;;  %v3055_v8 = vrot.slane %v481_v4, 7  ;;  %v510_v10 = vrot.slane %v481_v4, 4  ;;  %v511_v11 = vrot.slane %v484_v24, 5  ;;  %v453_v13 = vadd.f32 %v3043_v30, %v452_v5 }
  0xc6   : > { %v466_v27 = vrot.slane %v465_v3, 4  ;;  %v2595_v3 = vld [vmem:[#allocation4 + $0x1e4] sm:$0xf]  ;;  %v2117_v4 = vor.u32 %v2567_v62, %v2114_v63  ;;  %v2226_v5 = vld [vmem:[#allocation4 + $0x1e8] sm:$0xf0] }
  0xc7   : > { %v486_v17 = vor.u32 %v484_v24, %v3055_v8  ;;  %v456_v19 = vmax.f32 %v453_v13, 0.0  ;;  %v512_v22 = vor.u32 %v511_v11, %v510_v10  ;;  %v487_v45 = vrot.slane %v3055_v8, 4  ;;  %v1801_v8 = vld [vmem:[%s3248_s7 + $0x78] sm:$0xff] }
  0xc8   : > { %1168 = vmatpush.bf16.msra.mxu0 %v2117_v4  ;;  %v2301_v13 = vor.u32 %v2613_v6, %v2298_v7  ;;  %v2636_v4 = vld [vmem:[#allocation7 + $0x78] sm:$0xff]  ;;  %v2635_v6 = vld [vmem:[#allocation7 + $0x70] sm:$0xff] }
  0xc9   : > { %v502_v21 = vsel %vm3058_vm9, %v486_v17, %v501_v12  ;;  %v458_v25 = vpack.c.bf16 %v456_v19, %v456_v19  ;;  %v513_v32 = vrot.slane %v512_v22, 4  ;;  %v2229_v12 = vor.u32 %v2595_v3, %v2226_v5  ;;  %v2611_v17 = vld [vmem:[#allocation4 + $0x264] sm:$0xf]  ;;  %v2628_v3 = vld [vmem:[#allocation7 + $0x38] sm:$0xff]  ;;  %v2627_v5 = vld [vmem:[#allocation7 + $0x30] sm:$0xff] }
  0xca   : > { %503 = vst [vmem:[#allocation2 + $0x4] sm:$0xf] %v502_v21  ;;  %v1972_v57 = vld [vmem:[#allocation2 + $0x8] sm:$0xf]  ;;  %v2221_v21 = vor.u32 %v2593_v14, %v2218_v16  ;;  %v2293_v22 = vor.u32 %v2611_v17, %v2290_v18  ;;  %v2644_v7 = vld [vmem:[#allocation7 + $0xb8] sm:$0xff]  ;;  %v2625_v16 = vld [vmem:[#allocation7 + $0x20] sm:$0xff] }
  0xcb   : > { %v467_v28 = vrot.slane %v458_v25, 7  ;;  %v489_v29 = vshrl.u32 %v458_v25, 16  ;;  %v492_v30 = vshll.u32 %v458_v25, 16  ;;  %506 = vst [vmem:[#allocation2 + $0x1c] sm:$0xf] %v458_v25  ;;  %v537_v31 = vrot.slane %v458_v25, 5  ;;  %vm3141_vm9 = vmand %vm1233_vm7, %vm1255_vm12 }
  0xcc   : > { %v1964_v0 = vld [vmem:[#allocation2] sm:$0xf]  ;;  %v2210_v25 = vld [vmem:[#allocation4 + $0x1c8] sm:$0xf0]  ;;  %v2651_v14 = vld [vmem:[#allocation7 + $0xf0] sm:$0xff] }
  0xcd   : > { %v468_v37 = vsel %vm464_vm14, %v466_v27, %v467_v28  ;;  %v491_v38 = vrot.slane %v489_v29, 7  ;;  %v514_v39 = vrot.slane %v492_v30, 5  ;;  %v516_v40 = vrot.slane %v489_v29, 4  ;;  %v2282_v27 = vld [vmem:[#allocation4 + $0x258] sm:$0xf0]  ;;  %v2633_v17 = vld [vmem:[#allocation7 + $0x60] sm:$0xff]  ;;  %vm1257_vm13 = vmor %vm3141_vm9, %vm3087_vm3 }
  0xce   : > { %472 = vst [vmem:[#allocation2 + $0x14] sm:$0xf] %v468_v37  ;;  %v538_v42 = vsel %vm534_vm2, %v1961_v33, %v537_v31  ;;  %v539_v43 = vrot.slane %v537_v31, 4  ;;  %v2213_v28 = vor.u32 %v2591_v23, %v2210_v25  ;;  %v2285_v29 = vor.u32 %v2609_v26, %v2282_v27  ;;  %v2202_v31 = vld [vmem:[#allocation4 + $0x1b8] sm:$0xf0]  ;;  %v2641_v25 = vld [vmem:[#allocation7 + $0xa0] sm:$0xff] }
  0xcf   : > { %v494_v46 = vor.u32 %v492_v30, %v491_v38  ;;  %v515_v47 = vsel %vm3072_vm4, %v513_v32, %v514_v39  ;;  %v517_v48 = vor.u32 %v516_v40, %v514_v39  ;;  %542 = vst [vmem:[#allocation2 + $0x10] sm:$0xf] %v538_v42  ;;  %v2589_v30 = vld [vmem:[#allocation4 + $0x1b4] sm:$0xf]  ;;  %v2607_v32 = vld [vmem:[#allocation4 + $0x244] sm:$0xf] }
  0xd0   : > { %521 = vst [vmem:[#allocation2 + $0xc] sm:$0xf] %v515_v47  ;;  %v2205_v40 = vor.u32 %v2589_v30, %v2202_v31  ;;  %v2266_v47 = vld [vmem:[#allocation4 + $0x238] sm:$0xf0]  ;;  %v2649_v26 = vld [vmem:[#allocation7 + $0xe0] sm:$0xff]  ;;  %v2631_v30 = vld [vmem:[#allocation7 + $0x50] sm:$0xff] }
  0xd1   : > { %v495_v54 = vsel %vm3078_vm0, %v487_v45, %v494_v46  ;;  %v518_v55 = vrot.slane %v517_v48, 4  ;;  %543 = vst [vmem:[#allocation2 + $0x24] sm:$0x7] %v539_v43  ;;  %v2530_v10 = vld [vmem:[#allocation2 + $0x4] sm:$0xf]  ;;  %v2277_v43 = vor.u32 %v2607_v32, %v2274_v36  ;;  %v2640_v31 = vld [vmem:[#allocation7 + $0x98] sm:$0xff] }
  0xd2   : > { %504 = vst [vmem:[#allocation2 + $0x18] sm:$0xf] %v495_v54  ;;  %v2533_v58 = vld [vmem:[#allocation2 + $0x18] sm:$0xf0]  ;;  %v2194_v45 = vld [vmem:[#allocation4 + $0x1a8] sm:$0xf0] }
  0xd3   : > { %v524_v60 = vsel %vm3087_vm3, %v518_v55, %v523_v49  ;;  %v3095_v61 = vor.u32 %v2533_v58, %v1972_v57  ;;  %v2605_v46 = vld [vmem:[#allocation4 + $0x234] sm:$0xf]  ;;  %v2197_v48 = vor.u32 %v2587_v44, %v2194_v45  ;;  %v2258_v54 = vld [vmem:[#allocation4 + $0x228] sm:$0xf0]  ;;  %v2189_v55 = vor.u32 %v2585_v51, %v2186_v52  ;;  %v2583_v57 = vld [vmem:[#allocation4 + $0x184] sm:$0xf] }
  0xd4   : > { %525 = vst [vmem:[#allocation2 + $0x20] sm:$0xf] %v524_v60  ;;  %v2269_v49 = vor.u32 %v2605_v46, %v2266_v47  ;;  %v2261_v56 = vor.u32 %v2603_v53, %v2258_v54  ;;  %v2178_v58 = vld [vmem:[#allocation4 + $0x188] sm:$0xf0]  ;;  %v2250_v60 = vld [vmem:[#allocation4 + $0x218] sm:$0xf0] }
  0xd5   : > { %1099 = vmatmul.bf16.vlgmr.msra.gmra.mxu3 %v3095_v61  ;;  %v2532_v1 = vld [vmem:[#allocation2 + $0x10] sm:$0xf0]  ;;  %v2181_v62 = vor.u32 %v2583_v57, %v2178_v58  ;;  %v2253_v63 = vor.u32 %v2601_v59, %v2250_v60  ;;  %v2622_v36 = vld [vmem:[#allocation7 + $0x8] sm:$0xff]  ;;  %v2621_v45 = vld [vmem:[#allocation7] sm:$0xff]  ;;  %vm1262_vm14 = vsmask.f32 7966 }
  0xd6   : > { %v1965_v24 = vor.u32 %v2532_v1, %v1964_v0  ;;  %v1980_v33 = vld [vmem:[#allocation2 + $0x10] sm:$0xf]  ;;  %v2599_v0 = vld [vmem:[#allocation4 + $0x204] sm:$0xf]  ;;  %v2242_v1 = vld [vmem:[#allocation4 + $0x208] sm:$0xf0]  ;;  %1692 = vmatpush.bf16.msra.mxu3 %v2628_v3 }
  0xd7   : > { %v2531_v37 = vld [vmem:[#allocation2 + $0xc] sm:$0xf]  ;;  %v2648_v32 = vld [vmem:[#allocation7 + $0xd8] sm:$0xff]  ;;  %v2629_v46 = vld [vmem:[#allocation7 + $0x40] sm:$0xff] }
  0xd8   : > { %1071 = vmatmul.bf16.vlgmr.msra.gmra.mxu1 %v1965_v24  ;;  %v2534_v35 = vld [vmem:[#allocation2 + $0x20] sm:$0xf0]  ;;  %v2659_v57 = vld [vmem:[#allocation7 + $0x130] sm:$0xff]  ;;  %v2637_v59 = vld [vmem:[#allocation7 + $0x80] sm:$0xff] }
  0xd9   : > { %1175 = vmatpush.bf16.msra.mxu1 %v2237_v2  ;;  %v1966_v11 = vld [vmem:[#allocation2 + $0x14] sm:$0xf0]  ;;  %v1981_v42 = vor.u32 %v2534_v35, %v1980_v33  ;;  %v2245_v2 = vor.u32 %v2599_v0, %v2242_v1  ;;  %v631_v33 = vld [vmem:[%s3245_s4] sm:$0x3]  ;;  %v2667_v58 = vld [vmem:[#allocation7 + $0x170] sm:$0xff] }
  0xda   : > { %v1969_v15 = vor.u32 %v2530_v10, %v1966_v11  ;;  %v2652_v10 = vld [vmem:[#allocation7 + $0xf8] sm:$0xff]  ;;  %1693 = vmatpush.bf16.msra.mxu3 %v2627_v5  ;;  %v2626_v11 = vld [vmem:[#allocation7 + $0x28] sm:$0xff]  ;;  %v2645_v60 = vld [vmem:[#allocation7 + $0xc0] sm:$0xff] }
  0xdb   : > { %v529_v19 = vld [vmem:[#allocation2 + $0x20] sm:$0x8]  ;;  %vm1263_vm2 = vmand %vm1261_vm15, %vm1262_vm14 }
  0xdc   : > { %v530_v20 = vsel %vm3100_vm6, 0, %v529_v19  ;;  %1085 = vmatmul.bf16.vlgmr.msra.gmra.mxu2 %v1969_v15  ;;  %v2642_v19 = vld [vmem:[#allocation7 + $0xa8] sm:$0xff] }
  0xdd   : > { %531 = vst [vmem:[#allocation2 + $0x20] sm:$0x8] %v530_v20  ;;  %1176 = vmatpush.bf16.msra.mxu1 %v2229_v12  ;;  %1189 = vmatpush.bf16.msra.mxu2 %v2301_v13  ;;  %v2634_v12 = vld [vmem:[#allocation7 + $0x68] sm:$0xff]  ;;  %v2643_v13 = vld [vmem:[#allocation7 + $0xb0] sm:$0xff] }
  0xde   : > { %1694 = vmatpush.bf16.msra.mxu3 %v2626_v11  ;;  %v2650_v20 = vld [vmem:[#allocation7 + $0xe8] sm:$0xff]  ;;  %v2657_v11 = vld [vmem:[#allocation7 + $0x120] sm:$0xff] }
  0xdf   : > { %v2638_v52 = vld [vmem:[#allocation7 + $0x88] sm:$0xff] }
  0xe0   : > { %v2646_v53 = vld [vmem:[#allocation7 + $0xc8] sm:$0xff] }
  0xe1   : > { %1177 = vmatpush.bf16.msra.mxu1 %v2221_v21  ;;  %1190 = vmatpush.bf16.msra.mxu2 %v2293_v22  ;;  %v2624_v21 = vld [vmem:[#allocation7 + $0x18] sm:$0xff]  ;;  %v2666_v3 = vld [vmem:[#allocation7 + $0x168] sm:$0xff] }
  0xe2   : > { %1695 = vmatpush.bf16.msra.mxu3 %v2625_v16  ;;  %v2632_v22 = vld [vmem:[#allocation7 + $0x58] sm:$0xff] }
  0xe4   : > { %v1974_v38 = vld [vmem:[#allocation2 + $0x1c] sm:$0xf0] }
  0xe5   : > { %1155 = vmatmul.bf16.vlgmr.msrb.gmra.mxu3 %v1969_v15  ;;  %1178 = vmatpush.bf16.msra.mxu1 %v2213_v28  ;;  %v1977_v39 = vor.u32 %v2531_v37, %v1974_v38  ;;  %v2630_v37 = vld [vmem:[#allocation7 + $0x48] sm:$0xff] }
  0xe6   : > { %1191 = vmatpush.bf16.msra.mxu2 %v2285_v29  ;;  %1696 = vmatpush.bf16.msra.mxu3 %v2624_v21  ;;  %v2623_v29 = vld [vmem:[#allocation7 + $0x10] sm:$0xff] }
  0xe7   : > { %1113 = vmatmul.bf16.vlgmr.msrb.gmra.mxu0 %v1977_v39 }
  0xe8   : > { %1127 = vmatmul.bf16.vlgmr.msrb.gmra.mxu1 %v1981_v42  ;;  %1706 = vmatpush.bf16.msrb.mxu0 %v2636_v4 }
  0xe9   : > { %1179 = vmatpush.bf16.msra.mxu1 %v2205_v40  ;;  %v2639_v40 = vld [vmem:[#allocation7 + $0x90] sm:$0xff] }
  0xea   : > { %1192 = vmatpush.bf16.msra.mxu2 %v2277_v43  ;;  %1697 = vmatpush.bf16.msra.mxu3 %v2623_v29  ;;  %v634_v43 = vperm.slane %v631_v33, 1 }
  0xec   : > { %1141 = vmatmul.bf16.vlgmr.msrb.gmra.mxu2 %v1965_v24  ;;  %1707 = vmatpush.bf16.msrb.mxu0 %v2635_v6 }
  0xed   : > { %1180 = vmatpush.bf16.msra.mxu1 %v2197_v48  ;;  %v2660_v48 = vld [vmem:[#allocation7 + $0x138] sm:$0xff] }
  0xee   : > { %1193 = vmatpush.bf16.msra.mxu2 %v2269_v49  ;;  %1698 = vmatpush.bf16.msra.mxu3 %v2622_v36  ;;  %v2668_v49 = vld [vmem:[#allocation7 + $0x178] sm:$0xff] }
  0xf0   : > { %1708 = vmatpush.bf16.msrb.mxu0 %v2634_v12  ;;  %v2665_v12 = vld [vmem:[#allocation7 + $0x160] sm:$0xff] }
  0xf1   : > { %1181 = vmatpush.bf16.msra.mxu1 %v2189_v55 }
  0xf2   : > { %1194 = vmatpush.bf16.msra.mxu2 %v2261_v56  ;;  %1699 = vmatpush.bf16.msra.mxu3 %v2621_v45 }
  0xf4   : > { %1709 = vmatpush.bf16.msrb.mxu0 %v2633_v17 }
  0xf5   : > { %1182 = vmatpush.bf16.msra.mxu1 %v2181_v62 }
  0xf6   : > { %1195 = vmatpush.bf16.msra.mxu2 %v2253_v63  ;;  %1748 = vmatpush.bf16.msrb.mxu3 %v2660_v48 }
  0xf7   : > { %1169 = vmatmul.bf16.vlgmr.msra.gmra.mxu0 %v3095_v61 }
  0xf8   : > { %1183 = vmatmul.bf16.vlgmr.msra.gmra.mxu1 %v1977_v39  ;;  %1710 = vmatpush.bf16.msrb.mxu0 %v2632_v22  ;;  %v633_v39 = vperm.slane %v631_v33, 0  ;;  %v2655_v22 = vld [vmem:[#allocation7 + $0x110] sm:$0xff] }
  0xf9   : > { %1720 = vmatpush.bf16.msrb.mxu1 %v2644_v7 }
  0xfa   : > { %1196 = vmatpush.bf16.msra.mxu2 %v2245_v2  ;;  %1749 = vmatpush.bf16.msrb.mxu3 %v2659_v57  ;;  %v2658_v2 = vld [vmem:[#allocation7 + $0x128] sm:$0xff] }
  0xfc   : > { %1711 = vmatpush.bf16.msrb.mxu0 %v2631_v30 }
  0xfd   : > { %1197 = vmatmul.bf16.vlgmr.msra.gmra.mxu2 %v1981_v42  ;;  %1721 = vmatpush.bf16.msrb.mxu1 %v2643_v13  ;;  %v2647_v42 = vld [vmem:[#allocation7 + $0xd0] sm:$0xff] }
  0xfe   : > { %1734 = vmatpush.bf16.msrb.mxu2 %v2652_v10  ;;  %1750 = vmatpush.bf16.msrb.mxu3 %v2658_v2  ;;  %v1258_v2 = vld [vmem:[#allocation3 + $0x28] sm:$0xff] }
 0x100   : > { %1712 = vmatpush.bf16.msrb.mxu0 %v2630_v37 }
 0x101   : > { %1722 = vmatpush.bf16.msrb.mxu1 %v2642_v19  ;;  %v2656_v19 = vld [vmem:[#allocation7 + $0x118] sm:$0xff] }
 0x102   : > { %1735 = vmatpush.bf16.msrb.mxu2 %v2651_v14  ;;  %1751 = vmatpush.bf16.msrb.mxu3 %v2657_v11 }
 0x104   : > { %1713 = vmatpush.bf16.msrb.mxu0 %v2629_v46  ;;  %v2653_v46 = vld [vmem:[#allocation7 + $0x100] sm:$0xff] }
 0x105   : > { %1723 = vmatpush.bf16.msrb.mxu1 %v2641_v25 }
 0x106   : > { %1736 = vmatpush.bf16.msrb.mxu2 %v2650_v20  ;;  %v2664_v20 = vld [vmem:[#allocation7 + $0x158] sm:$0xff]  ;;  %1752 = vmatpush.bf16.msrb.mxu3 %v2656_v19 }
 0x108   : > { %1762 = vmatpush.bf16.msra.mxu0 %v2668_v49 }
 0x109   : > { %1724 = vmatpush.bf16.msrb.mxu1 %v2640_v31  ;;  %v2654_v31 = vld [vmem:[#allocation7 + $0x108] sm:$0xff] }
 0x10a   : > { %1737 = vmatpush.bf16.msrb.mxu2 %v2649_v26  ;;  %1753 = vmatpush.bf16.msrb.mxu3 %v2655_v22 }
 0x10c   : > { %1763 = vmatpush.bf16.msra.mxu0 %v2667_v58 }
 0x10d   : > { %1725 = vmatpush.bf16.msrb.mxu1 %v2639_v40 }
 0x10e   : > { %1738 = vmatpush.bf16.msrb.mxu2 %v2648_v32  ;;  %v2662_v32 = vld [vmem:[#allocation7 + $0x148] sm:$0xff]  ;;  %1754 = vmatpush.bf16.msrb.mxu3 %v2654_v31 }
 0x10f   : > { %v1794_v31 = vld [vmem:[%s3248_s7 + $0x40] sm:$0xff] }
 0x110   : > { %1764 = vmatpush.bf16.msra.mxu0 %v2666_v3 }
 0x111   : > { %1726 = vmatpush.bf16.msrb.mxu1 %v2638_v52 }
 0x112   : > { %1739 = vmatpush.bf16.msrb.mxu2 %v2647_v42  ;;  %v1237_v42 = vld [vmem:[#allocation3] sm:$0xff]  ;;  %1755 = vmatpush.bf16.msrb.mxu3 %v2653_v46 }
 0x113   : > { %v1787_v46 = vld [vmem:[%s3248_s7 + $0x8] sm:$0xff] }
 0x114   : > { %1765 = vmatpush.bf16.msra.mxu0 %v2665_v12 }
 0x115   : > { %1727 = vmatpush.bf16.msrb.mxu1 %v2637_v59 }
 0x116   : > { %1740 = vmatpush.bf16.msrb.mxu2 %v2646_v53 }
 0x118   : > { %1766 = vmatpush.bf16.msra.mxu0 %v2664_v20 }
 0x119   : > { %1803 = vmatpush.msra.mxu1 %v1801_v8 }
 0x11a   : > { %1741 = vmatpush.bf16.msrb.mxu2 %v2645_v60 }
 0x155   : > { %v3107_v24 = vpop.f32.mrf.mxu1 }
 0x156   : > { %v1073_v51 = vadd.f32 %v3107_v24, %v633_v39 }
 0x158   : > { %v3111_v18 = vpop.f32.mrf.mxu3 }
 0x15d   : > { %v3109_v61 = vpop.f32.mrf.mxu1 }
 0x15e   : > { %v1075_v4 = vadd.f32 %v3109_v61, %v633_v39 }
 0x15f   : > { %v1086_v15 = vpop.f32.mrf.mxu2 }
 0x160   : > { %v1102_v35 = vpop.f32.mrf.mxu3  ;;  %v1087_v54 = vadd.f32 %v1086_v15, %v1073_v51 }
 0x162   : > { %v1101_v63 = vadd.f32 %v3111_v18, %v1087_v54 }
 0x164   : > { %v3113_v23 = vpop.f32.mrf.mxu0 }
 0x165   : > { %v3115_v27 = vpop.f32.mrf.mxu1  ;;  %v1115_v5 = vadd.f32 %v3113_v23, %v1101_v63  ;;  %v2663_v23 = vld [vmem:[#allocation7 + $0x150] sm:$0xff] }
 0x166   : > { %1767 = vmatpush.bf16.msra.mxu0 %v2663_v23  ;;  %v1800_v23 = vld [vmem:[%s3248_s7 + $0x70] sm:$0xff] }
 0x167   : > { %v1088_v28 = vpop.f32.mrf.mxu2  ;;  %v1129_v14 = vadd.f32 %v3115_v27, %v1115_v5  ;;  %1804 = vmatpush.msra.mxu1 %v1800_v23 }
 0x168   : > { %v1156_v56 = vpop.f32.mrf.mxu3  ;;  %v1089_v6 = vadd.f32 %v1088_v28, %v1075_v4 }
 0x169   : > { %v1203_v25 = vmax.f32 %v1129_v14, 0.0 }
 0x16a   : > { %v1103_v15 = vadd.f32 %v1102_v35, %v1089_v6  ;;  %1768 = vmatpush.bf16.msra.mxu0 %v2662_v32 }
 0x16c   : > { %v3120_v38 = vpop.f32.mrf.mxu0 }
 0x16d   : > { %v3122_v47 = vpop.f32.mrf.mxu1  ;;  %v1117_v26 = vadd.f32 %v3120_v38, %v1103_v15 }
 0x16f   : > { %v1142_v44 = vpop.f32.mrf.mxu2  ;;  %v1131_v33 = vadd.f32 %v3122_v47, %v1117_v26  ;;  %v2661_v47 = vld [vmem:[#allocation7 + $0x140] sm:$0xff]  ;;  %v1798_v26 = vld [vmem:[%s3248_s7 + $0x60] sm:$0xff] }
 0x170   : > { %v1143_v55 = vadd.f32 %v1142_v44, %v634_v43  ;;  %v1158_v13 = vpop.f32.mrf.mxu3  ;;  %1769 = vmatpush.bf16.msra.mxu0 %v2661_v47 }
 0x171   : > { %v1205_v48 = vmax.f32 %v1131_v33, 0.0  ;;  %v1793_v33 = vld [vmem:[%s3248_s7 + $0x38] sm:$0xff] }
 0x172   : > { %v1157_v0 = vadd.f32 %v1156_v56, %v1143_v55 }
 0x174   : > { %v1170_v62 = vpop.f32.mrf.mxu0 }
 0x175   : > { %v1184_v24 = vpop.f32.mrf.mxu1  ;;  %v1171_v7 = vadd.f32 %v1170_v62, %v1157_v0 }
 0x177   : > { %v1144_v1 = vpop.f32.mrf.mxu2  ;;  %v1185_v16 = vadd.f32 %v1184_v24, %v1171_v7 }
 0x178   : > { %v1145_v10 = vadd.f32 %v1144_v1, %v634_v43 }
 0x17a   : > { %v1159_v17 = vadd.f32 %v1158_v13, %v1145_v10 }
 0x17c   : > { %v1172_v18 = vpop.f32.mrf.mxu0 }
 0x17d   : > { %v1173_v28 = vadd.f32 %v1172_v18, %v1159_v17  ;;  %v1186_v30 = vpop.f32.mrf.mxu1 }
 0x17f   : > { %v1187_v35 = vadd.f32 %v1186_v30, %v1173_v28  ;;  %v1797_v28 = vld [vmem:[%s3248_s7 + $0x58] sm:$0xff] }
 0x180   : > { %v1198_v61 = vpop.f32.mrf.mxu2 }
 0x181   : > { %v1199_v21 = vadd.f32 %v1198_v61, %v1185_v16 }
 0x183   : > { %v1204_v29 = vmax.f32 %v1199_v21, 0.0 }
 0x185   : > { %v1207_v27 = vpack.c.bf16 %v1204_v29, %v1203_v25  ;;  %v1799_v25 = vld [vmem:[%s3248_s7 + $0x68] sm:$0xff]  ;;  %v1796_v29 = vld [vmem:[%s3248_s7 + $0x50] sm:$0xff] }
 0x186   : > { %1805 = vmatpush.msra.mxu1 %v1799_v25 }
 0x187   : > { %v1216_v36 = vshrl.u32 %v1207_v27, 16  ;;  %v1219_v37 = vshll.u32 %v1207_v27, 16  ;;  %1241 = vst [vmem:[#allocation3 + $0x8] sm:$0xff] %v1207_v27  ;;  %v1795_v27 = vld [vmem:[%s3248_s7 + $0x48] sm:$0xff] }
 0x188   : > { %v1200_v38 = vpop.f32.mrf.mxu2  ;;  %1806 = vmatpush.msra.mxu1 %v1798_v26 }
 0x189   : > { %v1218_v40 = vrot.slane %v1216_v36, 7  ;;  %v1243_v43 = vrot.slane %v1216_v36, 4  ;;  %v1244_v44 = vrot.slane %v1219_v37, 5  ;;  %v1201_v45 = vadd.f32 %v1200_v38, %v1187_v35  ;;  %v1792_v35 = vld [vmem:[%s3248_s7 + $0x30] sm:$0xff]  ;;  %v2735_v36 = vld [vmem:[%s3247_s6] ss:$0 sm:$0xff] }
 0x18a   : > { %1807 = vmatpush.msra.mxu1 %v1797_v28  ;;  %v1790_v38 = vld [vmem:[%s3248_s7 + $0x20] sm:$0xff] }
 0x18b   : > { %v1221_v49 = vor.u32 %v1219_v37, %v1218_v40  ;;  %v1206_v51 = vmax.f32 %v1201_v45, 0.0  ;;  %v1245_v53 = vor.u32 %v1244_v44, %v1243_v43  ;;  %v1222_v62 = vrot.slane %v1218_v40, 4  ;;  %v1791_v37 = vld [vmem:[%s3248_s7 + $0x28] sm:$0xff]  ;;  %v1788_v45 = vld [vmem:[%s3248_s7 + $0x10] sm:$0xff] }
 0x18c   : > { %1808 = vmatpush.msra.mxu1 %v1796_v29 }
 0x18d   : > { %v1238_v52 = vsel %vm1236_vm11, %v1221_v49, %v1237_v42  ;;  %v1208_v54 = vpack.c.bf16 %v1206_v51, %v1205_v48  ;;  %v1246_v9 = vrot.slane %v1245_v53, 4  ;;  %v1789_v42 = vld [vmem:[%s3248_s7 + $0x18] sm:$0xff]  ;;  %v1786_v51 = vld [vmem:[%s3248_s7] sm:$0xff] }
 0x18e   : > { %1239 = vst [vmem:[#allocation3] sm:$0xff] %v1238_v52  ;;  %v2312_v24 = vld [vmem:[#allocation3 + $0x8] sm:$0xf]  ;;  %v2616_v5 = vld [vmem:[#allocation3 + $0xc] sm:$0xf]  ;;  %1809 = vmatpush.msra.mxu1 %v1795_v27 }
 0x18f   : > { %v1224_v55 = vshrl.u32 %v1208_v54, 16  ;;  %v1227_v56 = vshll.u32 %v1208_v54, 16  ;;  %1242 = vst [vmem:[#allocation3 + $0x20] sm:$0xff] %v1208_v54 }
 0x190   : > { %1810 = vmatpush.msra.mxu1 %v1794_v31 }
 0x191   : > { %v1226_v58 = vrot.slane %v1224_v55, 7  ;;  %v1247_v59 = vrot.slane %v1227_v56, 5  ;;  %v1249_v60 = vrot.slane %v1224_v55, 4 }
 0x192   : > { %1811 = vmatpush.msra.mxu1 %v1793_v33 }
 0x193   : > { %v1229_v63 = vor.u32 %v1227_v56, %v1226_v58  ;;  %v1248_v0 = vsel %vm3072_vm4, %v1246_v9, %v1247_v59  ;;  %v1250_v1 = vor.u32 %v1249_v60, %v1247_v59  ;;  %vm1264_vm4 = vmor %vm1263_vm2, %vm3100_vm6 }
 0x194   : > { %1254 = vst [vmem:[#allocation3 + $0x10] sm:$0xff] %v1248_v0  ;;  %1812 = vmatpush.msra.mxu1 %v1792_v35 }
 0x195   : > { %v1230_v3 = vsel %vm3078_vm0, %v1222_v62, %v1229_v63  ;;  %v1251_v4 = vrot.slane %v1250_v1, 4  ;;  %v2304_v50 = vld [vmem:[#allocation3] sm:$0xf]  ;;  %v2615_v12 = vld [vmem:[#allocation3 + $0x4] sm:$0xf]  ;;  %vm1823_vm0 = vcmask 16384  }
 0x196   : > { %1240 = vst [vmem:[#allocation3 + $0x18] sm:$0xff] %v1230_v3  ;;  %v2619_v6 = vld [vmem:[#allocation3 + $0x1c] sm:$0xf0]  ;;  %v2314_v34 = vld [vmem:[#allocation3 + $0x20] sm:$0xf0]  ;;  %1813 = vmatpush.msra.mxu1 %v1791_v37 }
 0x197   : > { %v1259_v7 = vsel %vm1257_vm13, %v1251_v4, %v1258_v2  ;;  %v2313_v10 = vor.u32 %v2619_v6, %v2312_v24  ;;  %v2317_v11 = vor.u32 %v2616_v5, %v2314_v34 }
 0x198   : > { %1260 = vst [vmem:[#allocation3 + $0x28] sm:$0xff] %v1259_v7  ;;  %1814 = vmatpush.msra.mxu1 %v1790_v38 }
 0x199   : > { %1728 = vmatmul.bf16.vlgmr.msrb.gmra.mxu1 %v2313_v10  ;;  %1742 = vmatmul.bf16.vlgmr.msrb.gmra.mxu2 %v2317_v11 }
 0x19a   : > { %1815 = vmatpush.msra.mxu1 %v1789_v42 }
 0x19b   : > { %v2320_v19 = vld [vmem:[#allocation3 + $0x10] sm:$0xf]  ;;  %v2617_v20 = vld [vmem:[#allocation3 + $0x14] sm:$0xf] }
 0x19c   : > { %1816 = vmatpush.msra.mxu1 %v1788_v45 }
 0x19d   : > { %v2618_v41 = vld [vmem:[#allocation3 + $0x14] sm:$0xf0]  ;;  %v2306_v13 = vld [vmem:[#allocation3 + $0x18] sm:$0xf0] }
 0x19e   : > { %v2305_v14 = vor.u32 %v2618_v41, %v2304_v50  ;;  %v2309_v15 = vor.u32 %v2615_v12, %v2306_v13  ;;  %1817 = vmatpush.msra.mxu1 %v1787_v46  ;;  %v1802_v41 = vld [vmem:[%s3249_s8] sm:$0x1] }
 0x19f   : > { %v1265_v16 = vld [vmem:[#allocation3 + $0x28] sm:$0x88] }
 0x1a0   : > { %v1266_v17 = vsel %vm1264_vm4, 0, %v1265_v16  ;;  %1700 = vmatmul.bf16.vlgmr.msra.gmra.mxu3 %v2305_v14  ;;  %1714 = vmatmul.bf16.vlgmr.msrb.gmra.mxu0 %v2309_v15 }
 0x1a1   : > { %1267 = vst [vmem:[#allocation3 + $0x28] sm:$0x88] %v1266_v17  ;;  %1818 = vmatpush.msra.mxu1 %v1786_v51 }
 0x1a8   : > { %v2620_v18 = vld [vmem:[#allocation3 + $0x24] sm:$0xf0]  ;;  %v2322_v61 = vld [vmem:[#allocation3 + $0x28] sm:$0xf0] }
 0x1a9   : > { %v2321_v21 = vor.u32 %v2620_v18, %v2320_v19  ;;  %v2325_v22 = vor.u32 %v2617_v20, %v2322_v61 }
 0x1b0   : > { %1756 = vmatmul.bf16.vlgmr.msrb.gmra.mxu3 %v2321_v21  ;;  %1770 = vmatmul.bf16.vlgmr.msra.gmra.mxu0 %v2325_v22 }
 0x216   : > { %v1729_v43 = vpop.f32.mrf.mxu1 }
 0x21c   : > { %v1743_v49 = vpop.f32.mrf.mxu2 }
 0x21d   : > { %v1715_v30 = vpop.f32.mrf.mxu0 }
 0x21e   : > { %v1731_v56 = vpop.f32.mrf.mxu1 }
 0x223   : > { %v1701_v32 = vpop.f32.mrf.mxu3 }
 0x224   : > { %v1702_v40 = vadd.f32 %v2735_v36, %v1701_v32  ;;  %v1745_v59 = vpop.f32.mrf.mxu2 }
 0x225   : > { %v1717_v39 = vpop.f32.mrf.mxu0 }
 0x226   : > { %v1716_v47 = vadd.f32 %v1715_v30, %v1702_v40 }
 0x228   : > { %v1730_v53 = vadd.f32 %v1729_v43, %v1716_v47 }
 0x22a   : > { %v1744_v9 = vadd.f32 %v1743_v49, %v1730_v53 }
 0x22b   : > { %v1703_v44 = vpop.f32.mrf.mxu3 }
 0x22c   : > { %v1704_v48 = vadd.f32 %v2735_v36, %v1703_v44 }
 0x22d   : > { %v1771_v54 = vpop.f32.mrf.mxu0 }
 0x22e   : > { %v1718_v52 = vadd.f32 %v1717_v39, %v1704_v48 }
 0x230   : > { %v1732_v57 = vadd.f32 %v1731_v56, %v1718_v52 }
 0x232   : > { %v1746_v60 = vadd.f32 %v1745_v59, %v1732_v57 }
 0x233   : > { %v1757_v55 = vpop.f32.mrf.mxu3 }
 0x234   : > { %v1758_v58 = vadd.f32 %v1757_v55, %v1744_v9 }
 0x235   : > { %v1773_v1 = vpop.f32.mrf.mxu0 }
 0x236   : > { %v1772_v63 = vadd.f32 %v1771_v54, %v1758_v58 }
 0x238   : > { %v1776_v3 = vmax.f32 %v1772_v63, 0.0 }
 0x23b   : > { %v1759_v62 = vpop.f32.mrf.mxu3 }
 0x23c   : > { %v1760_v0 = vadd.f32 %v1759_v62, %v1746_v60 }
 0x23e   : > { %v1774_v2 = vadd.f32 %v1773_v1, %v1760_v0 }
 0x240   : > { %v1777_v4 = vmax.f32 %v1774_v2, 0.0 }
 0x242   : > { %v1778_v24 = vadd.f32 %v1777_v4, %v1776_v3 }
 0x244   : > { %v1779_v5 = vrot.slane %v1778_v24, 4 }
 0x246   : > { %v1780_v6 = vadd.f32 %v1779_v5, %v1778_v24 }
 0x248   : > { %v1781_v34 = vrot.slane %v1780_v6, 2 }
 0x24a   : > { %v1782_v7 = vadd.f32 %v1781_v34, %v1780_v6 }
 0x24c   : > { %v1783_v10 = vrot.slane %v1782_v7, 1 }
 0x24e   : > { %v1784_v11 = vadd.f32 %v1783_v10, %v1782_v7 }
 0x250   : > { %v1785_v50 = vmul.f32 0.0625, %v1784_v11 }
 0x252   : > { %1819 = vmatmul.f32.vlgmr.msra.gmra.mxu1 %v1785_v50 }
 0x2cf   : > { %v1820_v12 = vpop.f32.mrf.mxu1 }
 0x2d0   : > { %v1821_v13 = vadd.f32 %v1820_v12, %v1802_v41 }
 0x2d2   : > { %1824 = vst.msk [vmem:[%s358_s24] sm:$0x1] %vm1823_vm0, %v1821_v13 }
 0x2d3   : > { %2823 = shalt.err (!%p2820_p8)
}
 0x2d4   : > { %2677 = dma.vmem_to_hbm [thread:$0]  (%p2963_p5), %s1837_s25, 16, %s1839_s3, %s1826_s21  }
 0x2d5 PF: > { %p2694_p9 = scmp.ge.s32.totalorder %s2866_s12, 2  ;;  %s1850_s29 = sand.u32 1, %s2854_s30  }
 0x2d6   : > { %s1851_s22 = scalar_lea.sflag [#allocation6], %s1850_s29 }
 0x2d7   : > { %p2687_p10 = pnand %p2694_p9, %p2967_p6 }
 0x2d9   : > { %p2688_p11 = pneg %p2687_p10 }
 0x2db   : > { %2849 = dma.done.wait (%p2688_p11), %s1851_s22, 16  }
 0x2dc   : > { %2851 = vsyncadd (%p2688_p11), %s1851_s22, 4294967280  ;;  %p21_p12 = scmp.ge.s32.totalorder %s2950_s15, 4   ;;  %s3272_s30 = smov %s2858_s10 }
 0x2dd   : > { %s3273_s10 = smov %s2862_s11  ;;  %s3274_s11 = smov %s2961_s18 }
 0x2de   : > { %s3275_s12 = smov %s2950_s15  ;;  %23 = sbr.rel (!%p21_p12) target bundleno = 7 (0x7), region = 100 }
 0x2e3   :  { %1856 = vsyncpa [#allocation5], 1 }
 0x2e4   :  { %1858 = vsyncpa [#allocation5 + $0x1], 1 }
 0x2e5   :  { %1859 = vsyncpa [#allocation8], 1 }
 0x2e6   :  { %1860 = vsyncpa [#allocation6], 1 }
 0x2e7   :  { %1862 = vsyncpa [#allocation6 + $0x1], 1 }

</bundles_post_ra>
